<compile_context>
chip_gen: v5e
topology: v5e:2x2
jax: 0.10.0
libtpu: 0.0.40
codegen_flags: <defaults>
</compile_context>

<pallas_src>
import functools

import jax
import jax.numpy as jnp
import numpy as np
from jax.experimental import pallas as pl
from jax.experimental.pallas import tpu as pltpu

LN_EPS = 1e-5
DP = 128  # padded feature width (lane dimension)


def _round_up(x, m):
    return (x + m - 1) // m * m


# ----------------------------------------------------------------------------
# Fused forward kernel
# ----------------------------------------------------------------------------
def _fused_kernel(x_ref,
                  enc_w_ref, enc_b_ref, enc_g_ref, enc_be_ref,
                  vqe_w_ref, vqe_b_ref,
                  cb_ref, cbb_ref, e2h_ref,
                  vqd_w_ref, vqd_b_ref,
                  dec_w1_ref, dec_b1_ref, dec_g_ref, dec_be_ref,
                  dec_w2_ref, dec_b2_ref,
                  out_ref, sse_ref,
                  *, n_real, d_model, d_out, input_dim,
                  enc_depth, dec_depth):
    i = pl.program_id(0)
    tile_n = x_ref.shape[0]

    def layernorm(h, gamma, beta, real_dim):
        # Padded feature columns of h are exactly zero (zero-padded weights,
        # biases), so full-lane sums equal sums over the real features; using
        # var = E[x^2] - mean^2 avoids any column mask.  gamma/beta padding is
        # zero, so padded output columns stay zero.
        inv = 1.0 / float(real_dim)
        mean = jnp.sum(h, axis=-1, keepdims=True) * inv
        ex2 = jnp.sum(h * h, axis=-1, keepdims=True) * inv
        var = ex2 - mean * mean
        return (h - mean) * jax.lax.rsqrt(var + LN_EPS) * gamma + beta

    def matmul(a, w_bf16):
        # bf16 operands, f32 accumulation on the MXU.
        return jnp.dot(a.astype(jnp.bfloat16), w_bf16,
                       preferred_element_type=jnp.float32)

    # ---------------- encoder: [Linear -> ReLU -> LayerNorm] x enc_depth -----
    h = x_ref[...]
    for d in range(enc_depth):
        a = matmul(h, enc_w_ref[d]) + enc_b_ref[d]
        a = jnp.maximum(a, 0.0)
        h = layernorm(a, enc_g_ref[d], enc_be_ref[d], d_model)

    # ---------------- encoder VQ projection (d_model -> d_out) ---------------
    z = matmul(h, vqe_w_ref[...]) + vqe_b_ref[...]          # f32 (tile, DP)

    # ---------------- vector quantizer ---------------------------------------
    # argmin(||z||^2 + ||e||^2 - 2 z.e) == argmin(0.5*||e||^2 - z.e)
    e_bf = cbb_ref[...]                                      # (Kp, DP) bf16
    kp = e_bf.shape[0]
    xe = jax.lax.dot_general(z.astype(jnp.bfloat16), e_bf,
                             (((1,), (1,)), ((), ())),
                             preferred_element_type=jnp.float32)   # (tile, Kp)
    dist = e2h_ref[...] - xe
    ids = jax.lax.broadcasted_iota(jnp.int32, (tile_n, kp), 1)
    dmin = jnp.min(dist, axis=-1, keepdims=True)
    idx = jnp.min(jnp.where(dist <= dmin, ids, kp), axis=-1, keepdims=True)
    onehot = (ids == idx).astype(jnp.float32)
    zq = jnp.dot(onehot, cb_ref[...],
                 preferred_element_type=jnp.float32)         # f32 gather (tile, DP)

    # Per-tile partial SSE (wrapper applies (1+c)/(n*d_out) and sums tiles).
    # Padded feature columns of zq and z are both zero; only padded rows of the
    # last tile need masking.
    row = jax.lax.broadcasted_iota(jnp.int32, (tile_n, 1), 0) + i * tile_n
    rmask = (row < n_real).astype(jnp.float32)
    diff = (zq - z) * rmask
    sse_ref[0, 0] = jnp.sum(diff * diff)

    # ---------------- decoder ------------------------------------------------
    # Straight-through forward value == zq ; use_raw_tokens=False -> vq_proj.
    h = matmul(zq, vqd_w_ref[...]) + vqd_b_ref[...]
    for d in range(dec_depth):
        real = input_dim if d == dec_depth - 1 else d_model
        a = matmul(h, dec_w1_ref[d]) + dec_b1_ref[d]
        a = jnp.maximum(a, 0.0)
        a = layernorm(a, dec_g_ref[d], dec_be_ref[d], real)
        h = matmul(a, dec_w2_ref[d]) + dec_b2_ref[d]

    out_ref[...] = h


# ----------------------------------------------------------------------------
# Wrapper: pad/tile, single pallas_call, reduce loss, slice back
# ----------------------------------------------------------------------------
def energy_vqvae_forward(x, params, commitment_cost):
    dims = params["dims"]
    input_dim = dims["input_dim"]
    d_model = dims["d_model"]
    d_out = dims["d_out"]
    enc_depth = dims["enc_depth"]
    dec_depth = dims["dec_depth"]

    B, L, Din = x.shape
    assert Din == input_dim
    n = B * L

    # Row tile: large (1024) once the problem is big enough to amortize the
    # per-grid-step overhead and MXU fill/drain; otherwise one full-array tile.
    # VMEM at tile_n=1024: ~0.5 MiB/buffer + ~1 MiB resident params -> tiny.
    tile_n = 1024 if n >= 1024 else _round_up(n, 8)
    n_pad = _round_up(n, tile_n)
    num_tiles = n_pad // tile_n

    # Input slab stored as bf16 (cast to bf16 before the first matmul anyway).
    x_flat = x.reshape(n, Din).astype(jnp.bfloat16)
    x_pad = jnp.zeros((n_pad, DP), jnp.bfloat16).at[:n, :Din].set(x_flat)

    k_pad = params["codebook"].shape[0]

    kernel = functools.partial(
        _fused_kernel,
        n_real=n, d_model=d_model, d_out=d_out, input_dim=input_dim,
        enc_depth=enc_depth, dec_depth=dec_depth)

    def const(shape):  # full-array block, resident across the whole grid
        return pl.BlockSpec(shape, lambda i, _s=shape: (0,) * len(_s))

    row_spec = pl.BlockSpec((tile_n, DP), lambda i: (i, 0))

    in_specs = [
        row_spec,                                                   # x
        const((enc_depth, DP, DP)), const((enc_depth, 1, DP)),      # enc W, b
        const((enc_depth, 1, DP)), const((enc_depth, 1, DP)),       # enc g, beta
        const((DP, DP)), const((1, DP)),                            # enc vq proj
        const((k_pad, DP)), const((k_pad, DP)), const((1, k_pad)),  # cb f32, cb bf16, 0.5||e||^2
        const((DP, DP)), const((1, DP)),                            # dec vq proj
        const((dec_depth, DP, DP)), const((dec_depth, 1, DP)),      # dec W1, b1
        const((dec_depth, 1, DP)), const((dec_depth, 1, DP)),       # dec g, beta
        const((dec_depth, DP, DP)), const((dec_depth, 1, DP)),      # dec W2, b2
    ]
    out_specs = (
        row_spec,                                                   # x_recon (padded)
        pl.BlockSpec((1, 1), lambda i: (i, 0),
                     memory_space=pltpu.MemorySpace.SMEM),          # per-tile SSE
    )
    out_shape = (
        jax.ShapeDtypeStruct((n_pad, DP), jnp.float32),
        jax.ShapeDtypeStruct((num_tiles, 1), jnp.float32),
    )

    args = (x_pad,
            params["enc_w"], params["enc_b"], params["enc_g"], params["enc_be"],
            params["vqe_w"], params["vqe_b"],
            params["codebook"], params["codebook_bf16"], params["e2_half"],
            params["vqd_w"], params["vqd_b"],
            params["dec_w1"], params["dec_b1"], params["dec_g"],
            params["dec_be"], params["dec_w2"], params["dec_b2"])

    n_mm = enc_depth + 2 + 2 * dec_depth
    flops = 2 * n_pad * DP * DP * n_mm + 4 * n_pad * DP * k_pad
    bytes_accessed = int(
        sum(int(np.prod(a.shape)) * a.dtype.itemsize for a in args)
        + n_pad * DP * 4 + num_tiles * 4)
    cost = pl.CostEstimate(flops=int(flops),
                           transcendentals=int(n_pad * (enc_depth + dec_depth)),
                           bytes_accessed=bytes_accessed)

    out_pad, sse_partials = pl.pallas_call(
        kernel,
        grid=(num_tiles,),
        in_specs=in_specs,
        out_specs=out_specs,
        out_shape=out_shape,
        compiler_params=pltpu.CompilerParams(
            # No cross-tile carry (per-tile partial SSE) -> parallel grid axis
            # so v7x can shard row tiles across both TensorCores.
            dimension_semantics=("parallel",),
            vmem_limit_bytes=32 * 1024 * 1024),
        cost_estimate=cost,
    )(*args)

    # loss = (1 + c) * MSE(zq, z), reduced in the wrapper from per-tile SSE.
    vq_loss = jnp.sum(sse_partials) * (
        (1.0 + float(commitment_cost)) / float(n * d_out))
    x_recon = out_pad[:n, :input_dim].reshape(B, L, input_dim)
    return x_recon, vq_loss


# ----------------------------------------------------------------------------
# Parameter construction (mimics nn.Linear / nn.Embedding init), pre-padded to
# lane-dense 128-wide slabs; weights stored in bfloat16 for the MXU.
# ----------------------------------------------------------------------------
def _linear_params(key, din, dout):
    kw, kb = jax.random.split(key)
    bound = 1.0 / np.sqrt(din)
    w = jax.random.uniform(kw, (din, dout), jnp.float32, -bound, bound)
    b = jax.random.uniform(kb, (dout,), jnp.float32, -bound, bound)
    return w, b


def _pad_w(w):   # (din, dout) -> (DP, DP) bf16, zero-padded
    full = jnp.zeros((DP, DP), jnp.float32).at[:w.shape[0], :w.shape[1]].set(w)
    return full.astype(jnp.bfloat16)


def _pad_row(v):  # (d,) -> (1, DP) f32, zero-padded
    return jnp.zeros((1, DP), jnp.float32).at[0, :v.shape[0]].set(v)


def make_params(key, input_dim, d_model, d_out, num_embeddings,
                encoder_depth, decoder_depth):
    keys = jax.random.split(key, encoder_depth + 2 * decoder_depth + 4)
    ki = iter(keys)

    enc_w, enc_b, enc_g, enc_be = [], [], [], []
    for i in range(encoder_depth):
        din = input_dim if i == 0 else d_model
        w, b = _linear_params(next(ki), din, d_model)
        enc_w.append(_pad_w(w))
        enc_b.append(_pad_row(b))
        enc_g.append(_pad_row(jnp.ones((d_model,), jnp.float32)))
        enc_be.append(_pad_row(jnp.zeros((d_model,), jnp.float32)))

    w, b = _linear_params(next(ki), d_model, d_out)
    vqe_w, vqe_b = _pad_w(w), _pad_row(b)

    # Codebook: K padded to a multiple of 128 lanes (lane-dense VQ tiles).
    k_pad = _round_up(max(num_embeddings, 128), 128)
    cb = jax.random.uniform(next(ki), (num_embeddings, d_out), jnp.float32,
                            -1.0 / num_embeddings, 1.0 / num_embeddings)
    cb_pad = jnp.zeros((k_pad, DP), jnp.float32).at[:num_embeddings, :d_out].set(cb)
    cb_bf16 = cb_pad.astype(jnp.bfloat16)
    # Precompute 0.5*||e||^2 (dist = 0.5||e||^2 - z.e, argmin-invariant);
    # padded codebook rows get a huge value so they are never selected.
    e2h = 0.5 * jnp.sum(cb_pad * cb_pad, axis=1)[None, :]
    if k_pad > num_embeddings:
        e2h = e2h.at[:, num_embeddings:].set(jnp.float32(1e30))

    w, b = _linear_params(next(ki), d_out, d_model)
    vqd_w, vqd_b = _pad_w(w), _pad_row(b)

    dec_w1, dec_b1, dec_g, dec_be, dec_w2, dec_b2 = [], [], [], [], [], []
    for i in range(decoder_depth):
        out_dim = input_dim if i == decoder_depth - 1 else d_model
        w1, b1 = _linear_params(next(ki), d_model, out_dim)
        w2, b2 = _linear_params(next(ki), out_dim, out_dim)
        dec_w1.append(_pad_w(w1)); dec_b1.append(_pad_row(b1))
        dec_g.append(_pad_row(jnp.ones((out_dim,), jnp.float32)))
        dec_be.append(_pad_row(jnp.zeros((out_dim,), jnp.float32)))
        dec_w2.append(_pad_w(w2)); dec_b2.append(_pad_row(b2))

    return {
        "enc_w": jnp.stack(enc_w), "enc_b": jnp.stack(enc_b),
        "enc_g": jnp.stack(enc_g), "enc_be": jnp.stack(enc_be),
        "vqe_w": vqe_w, "vqe_b": vqe_b,
        "codebook": cb_pad, "codebook_bf16": cb_bf16, "e2_half": e2h,
        "vqd_w": vqd_w, "vqd_b": vqd_b,
        "dec_w1": jnp.stack(dec_w1), "dec_b1": jnp.stack(dec_b1),
        "dec_g": jnp.stack(dec_g), "dec_be": jnp.stack(dec_be),
        "dec_w2": jnp.stack(dec_w2), "dec_b2": jnp.stack(dec_b2),
        "dims": dict(input_dim=input_dim, d_model=d_model, d_out=d_out,
                     enc_depth=encoder_depth, dec_depth=decoder_depth),
    }


if __name__ == "__main__":
    B, L = 2, 8
    input_dim, d_model, d_out = 32, 32, 16
    num_embeddings = 64
    commitment_cost = 0.25
    encoder_depth, decoder_depth = 2, 2

    key = jax.random.PRNGKey(0)
    kparams, kx = jax.random.split(key)
    params = make_params(kparams, input_dim, d_model, d_out, num_embeddings,
                         encoder_depth, decoder_depth)
    x = jax.random.normal(kx, (B, L, input_dim), jnp.float32)

    x_recon, vq_loss = energy_vqvae_forward(x, params, commitment_cost)
    jax.block_until_ready((x_recon, vq_loss))

    assert x_recon.shape == (B, L, input_dim)
    assert vq_loss.shape == ()
    assert bool(jnp.isfinite(vq_loss))
    assert bool(jnp.all(jnp.isfinite(x_recon)))
    print("KERNEL_OK")
</pallas_src>

<mosaic_0001>
module attributes {stable_mosaic.version = 11 : i64} {
  func.func @_fused_kernel(%arg0: i32, %arg1: memref<16x128xbf16, #tpu.memory_space<vmem>>, %arg2: memref<2x128x128xbf16, #tpu.memory_space<vmem>>, %arg3: memref<2x1x128xf32, #tpu.memory_space<vmem>>, %arg4: memref<2x1x128xf32, #tpu.memory_space<vmem>>, %arg5: memref<2x1x128xf32, #tpu.memory_space<vmem>>, %arg6: memref<128x128xbf16, #tpu.memory_space<vmem>>, %arg7: memref<1x128xf32, #tpu.memory_space<vmem>>, %arg8: memref<128x128xf32, #tpu.memory_space<vmem>>, %arg9: memref<128x128xbf16, #tpu.memory_space<vmem>>, %arg10: memref<1x128xf32, #tpu.memory_space<vmem>>, %arg11: memref<128x128xbf16, #tpu.memory_space<vmem>>, %arg12: memref<1x128xf32, #tpu.memory_space<vmem>>, %arg13: memref<2x128x128xbf16, #tpu.memory_space<vmem>>, %arg14: memref<2x1x128xf32, #tpu.memory_space<vmem>>, %arg15: memref<2x1x128xf32, #tpu.memory_space<vmem>>, %arg16: memref<2x1x128xf32, #tpu.memory_space<vmem>>, %arg17: memref<2x128x128xbf16, #tpu.memory_space<vmem>>, %arg18: memref<2x1x128xf32, #tpu.memory_space<vmem>>, %arg19: memref<16x128xf32, #tpu.memory_space<vmem>>, %arg20: memref<1x1xf32, #tpu.memory_space<smem>>) attributes {dimension_semantics = [#tpu.dimension_semantics<parallel>], iteration_bounds = array<i64: 1>, scalar_prefetch = 0 : i64, scratch_operands = 0 : i64, tpu.core_type = #tpu.core_type<tc>, window_params = [{transform_indices = @transform_0, window_bounds = array<i64: 16, 128>}, {pipeline_mode = #tpu.pipeline_mode<synchronous>, transform_indices = @transform_1, window_bounds = array<i64: 2, 128, 128>}, {pipeline_mode = #tpu.pipeline_mode<synchronous>, transform_indices = @transform_2, window_bounds = array<i64: 2, 1, 128>}, {pipeline_mode = #tpu.pipeline_mode<synchronous>, transform_indices = @transform_3, window_bounds = array<i64: 2, 1, 128>}, {pipeline_mode = #tpu.pipeline_mode<synchronous>, transform_indices = @transform_4, window_bounds = array<i64: 2, 1, 128>}, {pipeline_mode = #tpu.pipeline_mode<synchronous>, transform_indices = @transform_5, window_bounds = array<i64: 128, 128>}, {pipeline_mode = #tpu.pipeline_mode<synchronous>, transform_indices = @transform_6, window_bounds = array<i64: 1, 128>}, {pipeline_mode = #tpu.pipeline_mode<synchronous>, transform_indices = @transform_7, window_bounds = array<i64: 128, 128>}, {pipeline_mode = #tpu.pipeline_mode<synchronous>, transform_indices = @transform_8, window_bounds = array<i64: 128, 128>}, {pipeline_mode = #tpu.pipeline_mode<synchronous>, transform_indices = @transform_9, window_bounds = array<i64: 1, 128>}, {pipeline_mode = #tpu.pipeline_mode<synchronous>, transform_indices = @transform_10, window_bounds = array<i64: 128, 128>}, {pipeline_mode = #tpu.pipeline_mode<synchronous>, transform_indices = @transform_11, window_bounds = array<i64: 1, 128>}, {pipeline_mode = #tpu.pipeline_mode<synchronous>, transform_indices = @transform_12, window_bounds = array<i64: 2, 128, 128>}, {pipeline_mode = #tpu.pipeline_mode<synchronous>, transform_indices = @transform_13, window_bounds = array<i64: 2, 1, 128>}, {pipeline_mode = #tpu.pipeline_mode<synchronous>, transform_indices = @transform_14, window_bounds = array<i64: 2, 1, 128>}, {pipeline_mode = #tpu.pipeline_mode<synchronous>, transform_indices = @transform_15, window_bounds = array<i64: 2, 1, 128>}, {pipeline_mode = #tpu.pipeline_mode<synchronous>, transform_indices = @transform_16, window_bounds = array<i64: 2, 128, 128>}, {pipeline_mode = #tpu.pipeline_mode<synchronous>, transform_indices = @transform_17, window_bounds = array<i64: 2, 1, 128>}, {transform_indices = @transform_18, window_bounds = array<i64: 16, 128>}, {transform_indices = @transform_19, window_bounds = array<i64: 1, 1>}]} {
    %c0 = arith.constant 0 : index
    %c0_0 = arith.constant 0 : index
    %0 = vector.load %arg1[%c0, %c0_0] : memref<16x128xbf16, #tpu.memory_space<vmem>>, vector<16x128xbf16>
    %c0_1 = arith.constant 0 : index
    %c0_2 = arith.constant 0 : index
    %c0_3 = arith.constant 0 : index
    %1 = vector.load %arg2[%c0_1, %c0_2, %c0_3] : memref<2x128x128xbf16, #tpu.memory_space<vmem>>, vector<1x128x128xbf16>
    %2 = vector.shape_cast %1 : vector<1x128x128xbf16> to vector<128x128xbf16>
    %cst = arith.constant dense<0.000000e+00> : vector<16x128xf32>
    %3 = tpu.matmul %0, %2, %cst {dimension_numbers = #tpu.dot_dimension_numbers<[1], [0], [0], [1], [0, 0, 1, 1], [], []>} : vector<16x128xbf16>, vector<128x128xbf16>, vector<16x128xf32> -> vector<16x128xf32>
    %c0_4 = arith.constant 0 : index
    %c0_5 = arith.constant 0 : index
    %c0_6 = arith.constant 0 : index
    %4 = vector.load %arg3[%c0_4, %c0_5, %c0_6] : memref<2x1x128xf32, #tpu.memory_space<vmem>>, vector<1x1x128xf32>
    %5 = vector.shape_cast %4 : vector<1x1x128xf32> to vector<1x128xf32>
    %6 = vector.broadcast %5 : vector<1x128xf32> to vector<16x128xf32>
    %7 = arith.addf %3, %6 : vector<16x128xf32>
    %cst_7 = arith.constant 0.000000e+00 : f32
    %8 = vector.broadcast %cst_7 : f32 to vector<16x128xf32>
    %9 = arith.maximumf %7, %8 : vector<16x128xf32>
    %c0_8 = arith.constant 0 : index
    %c0_9 = arith.constant 0 : index
    %c0_10 = arith.constant 0 : index
    %10 = vector.load %arg4[%c0_8, %c0_9, %c0_10] : memref<2x1x128xf32, #tpu.memory_space<vmem>>, vector<1x1x128xf32>
    %11 = vector.shape_cast %10 : vector<1x1x128xf32> to vector<1x128xf32>
    %c0_11 = arith.constant 0 : index
    %c0_12 = arith.constant 0 : index
    %c0_13 = arith.constant 0 : index
    %12 = vector.load %arg5[%c0_11, %c0_12, %c0_13] : memref<2x1x128xf32, #tpu.memory_space<vmem>>, vector<1x1x128xf32>
    %13 = vector.shape_cast %12 : vector<1x1x128xf32> to vector<1x128xf32>
    %cst_14 = arith.constant dense<0.000000e+00> : vector<16xf32>
    %14 = vector.multi_reduction <add>, %9, %cst_14 [1] : vector<16x128xf32> to vector<16xf32>
    %15 = vector.shape_cast %14 : vector<16xf32> to vector<16x1xf32>
    %cst_15 = arith.constant 3.125000e-02 : f32
    %16 = vector.broadcast %cst_15 : f32 to vector<16x1xf32>
    %17 = arith.mulf %15, %16 : vector<16x1xf32>
    %18 = arith.mulf %9, %9 : vector<16x128xf32>
    %cst_16 = arith.constant dense<0.000000e+00> : vector<16xf32>
    %19 = vector.multi_reduction <add>, %18, %cst_16 [1] : vector<16x128xf32> to vector<16xf32>
    %20 = vector.shape_cast %19 : vector<16xf32> to vector<16x1xf32>
    %cst_17 = arith.constant 3.125000e-02 : f32
    %21 = vector.broadcast %cst_17 : f32 to vector<16x1xf32>
    %22 = arith.mulf %20, %21 : vector<16x1xf32>
    %23 = arith.mulf %17, %17 : vector<16x1xf32>
    %24 = arith.subf %22, %23 : vector<16x1xf32>
    %25 = vector.broadcast %17 : vector<16x1xf32> to vector<16x128xf32>
    %26 = arith.subf %9, %25 : vector<16x128xf32>
    %cst_18 = arith.constant 9.99999974E-6 : f32
    %27 = vector.broadcast %cst_18 : f32 to vector<16x1xf32>
    %28 = arith.addf %24, %27 : vector<16x1xf32>
    %29 = math.rsqrt %28 : vector<16x1xf32>
    %30 = vector.broadcast %29 : vector<16x1xf32> to vector<16x128xf32>
    %31 = arith.mulf %26, %30 : vector<16x128xf32>
    %32 = vector.broadcast %11 : vector<1x128xf32> to vector<16x128xf32>
    %33 = arith.mulf %31, %32 : vector<16x128xf32>
    %34 = vector.broadcast %13 : vector<1x128xf32> to vector<16x128xf32>
    %35 = arith.addf %33, %34 : vector<16x128xf32>
    %c1 = arith.constant 1 : index
    %c0_19 = arith.constant 0 : index
    %c0_20 = arith.constant 0 : index
    %36 = vector.load %arg2[%c1, %c0_19, %c0_20] : memref<2x128x128xbf16, #tpu.memory_space<vmem>>, vector<1x128x128xbf16>
    %37 = vector.shape_cast %36 : vector<1x128x128xbf16> to vector<128x128xbf16>
    %38 = arith.truncf %35 : vector<16x128xf32> to vector<16x128xbf16>
    %cst_21 = arith.constant dense<0.000000e+00> : vector<16x128xf32>
    %39 = tpu.matmul %38, %37, %cst_21 {dimension_numbers = #tpu.dot_dimension_numbers<[1], [0], [0], [1], [0, 0, 1, 1], [], []>} : vector<16x128xbf16>, vector<128x128xbf16>, vector<16x128xf32> -> vector<16x128xf32>
    %c1_22 = arith.constant 1 : index
    %c0_23 = arith.constant 0 : index
    %c0_24 = arith.constant 0 : index
    %40 = vector.load %arg3[%c1_22, %c0_23, %c0_24] : memref<2x1x128xf32, #tpu.memory_space<vmem>>, vector<1x1x128xf32>
    %41 = vector.shape_cast %40 : vector<1x1x128xf32> to vector<1x128xf32>
    %42 = vector.broadcast %41 : vector<1x128xf32> to vector<16x128xf32>
    %43 = arith.addf %39, %42 : vector<16x128xf32>
    %cst_25 = arith.constant 0.000000e+00 : f32
    %44 = vector.broadcast %cst_25 : f32 to vector<16x128xf32>
    %45 = arith.maximumf %43, %44 : vector<16x128xf32>
    %c1_26 = arith.constant 1 : index
    %c0_27 = arith.constant 0 : index
    %c0_28 = arith.constant 0 : index
    %46 = vector.load %arg4[%c1_26, %c0_27, %c0_28] : memref<2x1x128xf32, #tpu.memory_space<vmem>>, vector<1x1x128xf32>
    %47 = vector.shape_cast %46 : vector<1x1x128xf32> to vector<1x128xf32>
    %c1_29 = arith.constant 1 : index
    %c0_30 = arith.constant 0 : index
    %c0_31 = arith.constant 0 : index
    %48 = vector.load %arg5[%c1_29, %c0_30, %c0_31] : memref<2x1x128xf32, #tpu.memory_space<vmem>>, vector<1x1x128xf32>
    %49 = vector.shape_cast %48 : vector<1x1x128xf32> to vector<1x128xf32>
    %cst_32 = arith.constant dense<0.000000e+00> : vector<16xf32>
    %50 = vector.multi_reduction <add>, %45, %cst_32 [1] : vector<16x128xf32> to vector<16xf32>
    %51 = vector.shape_cast %50 : vector<16xf32> to vector<16x1xf32>
    %cst_33 = arith.constant 3.125000e-02 : f32
    %52 = vector.broadcast %cst_33 : f32 to vector<16x1xf32>
    %53 = arith.mulf %51, %52 : vector<16x1xf32>
    %54 = arith.mulf %45, %45 : vector<16x128xf32>
    %cst_34 = arith.constant dense<0.000000e+00> : vector<16xf32>
    %55 = vector.multi_reduction <add>, %54, %cst_34 [1] : vector<16x128xf32> to vector<16xf32>
    %56 = vector.shape_cast %55 : vector<16xf32> to vector<16x1xf32>
    %cst_35 = arith.constant 3.125000e-02 : f32
    %57 = vector.broadcast %cst_35 : f32 to vector<16x1xf32>
    %58 = arith.mulf %56, %57 : vector<16x1xf32>
    %59 = arith.mulf %53, %53 : vector<16x1xf32>
    %60 = arith.subf %58, %59 : vector<16x1xf32>
    %61 = vector.broadcast %53 : vector<16x1xf32> to vector<16x128xf32>
    %62 = arith.subf %45, %61 : vector<16x128xf32>
    %cst_36 = arith.constant 9.99999974E-6 : f32
    %63 = vector.broadcast %cst_36 : f32 to vector<16x1xf32>
    %64 = arith.addf %60, %63 : vector<16x1xf32>
    %65 = math.rsqrt %64 : vector<16x1xf32>
    %66 = vector.broadcast %65 : vector<16x1xf32> to vector<16x128xf32>
    %67 = arith.mulf %62, %66 : vector<16x128xf32>
    %68 = vector.broadcast %47 : vector<1x128xf32> to vector<16x128xf32>
    %69 = arith.mulf %67, %68 : vector<16x128xf32>
    %70 = vector.broadcast %49 : vector<1x128xf32> to vector<16x128xf32>
    %71 = arith.addf %69, %70 : vector<16x128xf32>
    %c0_37 = arith.constant 0 : index
    %c0_38 = arith.constant 0 : index
    %72 = vector.load %arg6[%c0_37, %c0_38] : memref<128x128xbf16, #tpu.memory_space<vmem>>, vector<128x128xbf16>
    %73 = arith.truncf %71 : vector<16x128xf32> to vector<16x128xbf16>
    %cst_39 = arith.constant dense<0.000000e+00> : vector<16x128xf32>
    %74 = tpu.matmul %73, %72, %cst_39 {dimension_numbers = #tpu.dot_dimension_numbers<[1], [0], [0], [1], [0, 0, 1, 1], [], []>} : vector<16x128xbf16>, vector<128x128xbf16>, vector<16x128xf32> -> vector<16x128xf32>
    %c0_40 = arith.constant 0 : index
    %c0_41 = arith.constant 0 : index
    %75 = vector.load %arg7[%c0_40, %c0_41] : memref<1x128xf32, #tpu.memory_space<vmem>>, vector<1x128xf32>
    %76 = vector.broadcast %75 : vector<1x128xf32> to vector<16x128xf32>
    %77 = arith.addf %74, %76 : vector<16x128xf32>
    %c0_42 = arith.constant 0 : index
    %c0_43 = arith.constant 0 : index
    %78 = vector.load %arg9[%c0_42, %c0_43] : memref<128x128xbf16, #tpu.memory_space<vmem>>, vector<128x128xbf16>
    %79 = arith.truncf %77 : vector<16x128xf32> to vector<16x128xbf16>
    %cst_44 = arith.constant dense<0.000000e+00> : vector<16x128xf32>
    %80 = tpu.matmul %79, %78, %cst_44 {dimension_numbers = #tpu.dot_dimension_numbers<[1], [1], [0], [0], [0, 0, 1, 0], [], []>} : vector<16x128xbf16>, vector<128x128xbf16>, vector<16x128xf32> -> vector<16x128xf32>
    %c0_45 = arith.constant 0 : index
    %c0_46 = arith.constant 0 : index
    %81 = vector.load %arg10[%c0_45, %c0_46] : memref<1x128xf32, #tpu.memory_space<vmem>>, vector<1x128xf32>
    %82 = vector.broadcast %81 : vector<1x128xf32> to vector<16x128xf32>
    %83 = arith.subf %82, %80 : vector<16x128xf32>
    %84 = tpu.iota {dimensions = array<i32: 1>} : vector<16x128xi32>
    %cst_47 = arith.constant dense<0x7F800000> : vector<16xf32>
    %85 = vector.multi_reduction <minimumf>, %83, %cst_47 [1] : vector<16x128xf32> to vector<16xf32>
    %86 = vector.shape_cast %85 : vector<16xf32> to vector<16x1xf32>
    %87 = vector.broadcast %86 : vector<16x1xf32> to vector<16x128xf32>
    %88 = arith.cmpf ole, %83, %87 : vector<16x128xf32>
    %c128_i32 = arith.constant 128 : i32
    %89 = vector.broadcast %c128_i32 : i32 to vector<16x128xi32>
    %90 = arith.select %88, %84, %89 : vector<16x128xi1>, vector<16x128xi32>
    %cst_48 = arith.constant dense<2147483647> : vector<16xi32>
    %91 = vector.multi_reduction <minsi>, %90, %cst_48 [1] : vector<16x128xi32> to vector<16xi32>
    %92 = vector.shape_cast %91 : vector<16xi32> to vector<16x1xi32>
    %93 = vector.broadcast %92 : vector<16x1xi32> to vector<16x128xi32>
    %94 = arith.cmpi eq, %84, %93 : vector<16x128xi32>
    %95 = arith.extui %94 : vector<16x128xi1> to vector<16x128xi32>
    %96 = arith.sitofp %95 : vector<16x128xi32> to vector<16x128xf32>
    %c0_49 = arith.constant 0 : index
    %c0_50 = arith.constant 0 : index
    %97 = vector.load %arg8[%c0_49, %c0_50] : memref<128x128xf32, #tpu.memory_space<vmem>>, vector<128x128xf32>
    %cst_51 = arith.constant dense<0.000000e+00> : vector<16x128xf32>
    %98 = tpu.matmul %96, %97, %cst_51 {dimension_numbers = #tpu.dot_dimension_numbers<[1], [0], [0], [1], [0, 0, 1, 1], [], []>} : vector<16x128xf32>, vector<128x128xf32>, vector<16x128xf32> -> vector<16x128xf32>
    %99 = tpu.iota {dimensions = array<i32: 0>} : vector<16x1xi32>
    %c16_i32 = arith.constant 16 : i32
    %100 = arith.muli %arg0, %c16_i32 : i32
    %101 = vector.broadcast %100 : i32 to vector<16x1xi32>
    %102 = arith.addi %99, %101 : vector<16x1xi32>
    %c16_i32_52 = arith.constant 16 : i32
    %103 = vector.broadcast %c16_i32_52 : i32 to vector<16x1xi32>
    %104 = arith.cmpi slt, %102, %103 : vector<16x1xi32>
    %105 = arith.extui %104 : vector<16x1xi1> to vector<16x1xi32>
    %106 = arith.sitofp %105 : vector<16x1xi32> to vector<16x1xf32>
    %107 = arith.subf %98, %77 : vector<16x128xf32>
    %108 = vector.broadcast %106 : vector<16x1xf32> to vector<16x128xf32>
    %109 = arith.mulf %107, %108 : vector<16x128xf32>
    %110 = arith.mulf %109, %109 : vector<16x128xf32>
    %111 = vector.shape_cast %110 : vector<16x128xf32> to vector<1x16x128xf32>
    %cst_53 = arith.constant dense<0.000000e+00> : vector<1xf32>
    %112 = vector.multi_reduction <add>, %111, %cst_53 [1, 2] : vector<1x16x128xf32> to vector<1xf32>
    %113 = vector.shape_cast %112 : vector<1xf32> to vector<1x1x1xf32>
    %114 = vector.extract %113[0, 0, 0] : f32 from vector<1x1x1xf32>
    %c0_54 = arith.constant 0 : index
    %c0_55 = arith.constant 0 : index
    %115 = memref.load %arg20[%c0_54, %c0_55] : memref<1x1xf32, #tpu.memory_space<smem>>
    memref.store %114, %arg20[%c0_54, %c0_55] : memref<1x1xf32, #tpu.memory_space<smem>>
    %c0_56 = arith.constant 0 : index
    %c0_57 = arith.constant 0 : index
    %116 = vector.load %arg11[%c0_56, %c0_57] : memref<128x128xbf16, #tpu.memory_space<vmem>>, vector<128x128xbf16>
    %117 = arith.truncf %98 : vector<16x128xf32> to vector<16x128xbf16>
    %cst_58 = arith.constant dense<0.000000e+00> : vector<16x128xf32>
    %118 = tpu.matmul %117, %116, %cst_58 {dimension_numbers = #tpu.dot_dimension_numbers<[1], [0], [0], [1], [0, 0, 1, 1], [], []>} : vector<16x128xbf16>, vector<128x128xbf16>, vector<16x128xf32> -> vector<16x128xf32>
    %c0_59 = arith.constant 0 : index
    %c0_60 = arith.constant 0 : index
    %119 = vector.load %arg12[%c0_59, %c0_60] : memref<1x128xf32, #tpu.memory_space<vmem>>, vector<1x128xf32>
    %120 = vector.broadcast %119 : vector<1x128xf32> to vector<16x128xf32>
    %121 = arith.addf %118, %120 : vector<16x128xf32>
    %c0_61 = arith.constant 0 : index
    %c0_62 = arith.constant 0 : index
    %c0_63 = arith.constant 0 : index
    %122 = vector.load %arg13[%c0_61, %c0_62, %c0_63] : memref<2x128x128xbf16, #tpu.memory_space<vmem>>, vector<1x128x128xbf16>
    %123 = vector.shape_cast %122 : vector<1x128x128xbf16> to vector<128x128xbf16>
    %124 = arith.truncf %121 : vector<16x128xf32> to vector<16x128xbf16>
    %cst_64 = arith.constant dense<0.000000e+00> : vector<16x128xf32>
    %125 = tpu.matmul %124, %123, %cst_64 {dimension_numbers = #tpu.dot_dimension_numbers<[1], [0], [0], [1], [0, 0, 1, 1], [], []>} : vector<16x128xbf16>, vector<128x128xbf16>, vector<16x128xf32> -> vector<16x128xf32>
    %c0_65 = arith.constant 0 : index
    %c0_66 = arith.constant 0 : index
    %c0_67 = arith.constant 0 : index
    %126 = vector.load %arg14[%c0_65, %c0_66, %c0_67] : memref<2x1x128xf32, #tpu.memory_space<vmem>>, vector<1x1x128xf32>
    %127 = vector.shape_cast %126 : vector<1x1x128xf32> to vector<1x128xf32>
    %128 = vector.broadcast %127 : vector<1x128xf32> to vector<16x128xf32>
    %129 = arith.addf %125, %128 : vector<16x128xf32>
    %cst_68 = arith.constant 0.000000e+00 : f32
    %130 = vector.broadcast %cst_68 : f32 to vector<16x128xf32>
    %131 = arith.maximumf %129, %130 : vector<16x128xf32>
    %c0_69 = arith.constant 0 : index
    %c0_70 = arith.constant 0 : index
    %c0_71 = arith.constant 0 : index
    %132 = vector.load %arg15[%c0_69, %c0_70, %c0_71] : memref<2x1x128xf32, #tpu.memory_space<vmem>>, vector<1x1x128xf32>
    %133 = vector.shape_cast %132 : vector<1x1x128xf32> to vector<1x128xf32>
    %c0_72 = arith.constant 0 : index
    %c0_73 = arith.constant 0 : index
    %c0_74 = arith.constant 0 : index
    %134 = vector.load %arg16[%c0_72, %c0_73, %c0_74] : memref<2x1x128xf32, #tpu.memory_space<vmem>>, vector<1x1x128xf32>
    %135 = vector.shape_cast %134 : vector<1x1x128xf32> to vector<1x128xf32>
    %cst_75 = arith.constant dense<0.000000e+00> : vector<16xf32>
    %136 = vector.multi_reduction <add>, %131, %cst_75 [1] : vector<16x128xf32> to vector<16xf32>
    %137 = vector.shape_cast %136 : vector<16xf32> to vector<16x1xf32>
    %cst_76 = arith.constant 3.125000e-02 : f32
    %138 = vector.broadcast %cst_76 : f32 to vector<16x1xf32>
    %139 = arith.mulf %137, %138 : vector<16x1xf32>
    %140 = arith.mulf %131, %131 : vector<16x128xf32>
    %cst_77 = arith.constant dense<0.000000e+00> : vector<16xf32>
    %141 = vector.multi_reduction <add>, %140, %cst_77 [1] : vector<16x128xf32> to vector<16xf32>
    %142 = vector.shape_cast %141 : vector<16xf32> to vector<16x1xf32>
    %cst_78 = arith.constant 3.125000e-02 : f32
    %143 = vector.broadcast %cst_78 : f32 to vector<16x1xf32>
    %144 = arith.mulf %142, %143 : vector<16x1xf32>
    %145 = arith.mulf %139, %139 : vector<16x1xf32>
    %146 = arith.subf %144, %145 : vector<16x1xf32>
    %147 = vector.broadcast %139 : vector<16x1xf32> to vector<16x128xf32>
    %148 = arith.subf %131, %147 : vector<16x128xf32>
    %cst_79 = arith.constant 9.99999974E-6 : f32
    %149 = vector.broadcast %cst_79 : f32 to vector<16x1xf32>
    %150 = arith.addf %146, %149 : vector<16x1xf32>
    %151 = math.rsqrt %150 : vector<16x1xf32>
    %152 = vector.broadcast %151 : vector<16x1xf32> to vector<16x128xf32>
    %153 = arith.mulf %148, %152 : vector<16x128xf32>
    %154 = vector.broadcast %133 : vector<1x128xf32> to vector<16x128xf32>
    %155 = arith.mulf %153, %154 : vector<16x128xf32>
    %156 = vector.broadcast %135 : vector<1x128xf32> to vector<16x128xf32>
    %157 = arith.addf %155, %156 : vector<16x128xf32>
    %c0_80 = arith.constant 0 : index
    %c0_81 = arith.constant 0 : index
    %c0_82 = arith.constant 0 : index
    %158 = vector.load %arg17[%c0_80, %c0_81, %c0_82] : memref<2x128x128xbf16, #tpu.memory_space<vmem>>, vector<1x128x128xbf16>
    %159 = vector.shape_cast %158 : vector<1x128x128xbf16> to vector<128x128xbf16>
    %160 = arith.truncf %157 : vector<16x128xf32> to vector<16x128xbf16>
    %cst_83 = arith.constant dense<0.000000e+00> : vector<16x128xf32>
    %161 = tpu.matmul %160, %159, %cst_83 {dimension_numbers = #tpu.dot_dimension_numbers<[1], [0], [0], [1], [0, 0, 1, 1], [], []>} : vector<16x128xbf16>, vector<128x128xbf16>, vector<16x128xf32> -> vector<16x128xf32>
    %c0_84 = arith.constant 0 : index
    %c0_85 = arith.constant 0 : index
    %c0_86 = arith.constant 0 : index
    %162 = vector.load %arg18[%c0_84, %c0_85, %c0_86] : memref<2x1x128xf32, #tpu.memory_space<vmem>>, vector<1x1x128xf32>
    %163 = vector.shape_cast %162 : vector<1x1x128xf32> to vector<1x128xf32>
    %164 = vector.broadcast %163 : vector<1x128xf32> to vector<16x128xf32>
    %165 = arith.addf %161, %164 : vector<16x128xf32>
    %c1_87 = arith.constant 1 : index
    %c0_88 = arith.constant 0 : index
    %c0_89 = arith.constant 0 : index
    %166 = vector.load %arg13[%c1_87, %c0_88, %c0_89] : memref<2x128x128xbf16, #tpu.memory_space<vmem>>, vector<1x128x128xbf16>
    %167 = vector.shape_cast %166 : vector<1x128x128xbf16> to vector<128x128xbf16>
    %168 = arith.truncf %165 : vector<16x128xf32> to vector<16x128xbf16>
    %cst_90 = arith.constant dense<0.000000e+00> : vector<16x128xf32>
    %169 = tpu.matmul %168, %167, %cst_90 {dimension_numbers = #tpu.dot_dimension_numbers<[1], [0], [0], [1], [0, 0, 1, 1], [], []>} : vector<16x128xbf16>, vector<128x128xbf16>, vector<16x128xf32> -> vector<16x128xf32>
    %c1_91 = arith.constant 1 : index
    %c0_92 = arith.constant 0 : index
    %c0_93 = arith.constant 0 : index
    %170 = vector.load %arg14[%c1_91, %c0_92, %c0_93] : memref<2x1x128xf32, #tpu.memory_space<vmem>>, vector<1x1x128xf32>
    %171 = vector.shape_cast %170 : vector<1x1x128xf32> to vector<1x128xf32>
    %172 = vector.broadcast %171 : vector<1x128xf32> to vector<16x128xf32>
    %173 = arith.addf %169, %172 : vector<16x128xf32>
    %cst_94 = arith.constant 0.000000e+00 : f32
    %174 = vector.broadcast %cst_94 : f32 to vector<16x128xf32>
    %175 = arith.maximumf %173, %174 : vector<16x128xf32>
    %c1_95 = arith.constant 1 : index
    %c0_96 = arith.constant 0 : index
    %c0_97 = arith.constant 0 : index
    %176 = vector.load %arg15[%c1_95, %c0_96, %c0_97] : memref<2x1x128xf32, #tpu.memory_space<vmem>>, vector<1x1x128xf32>
    %177 = vector.shape_cast %176 : vector<1x1x128xf32> to vector<1x128xf32>
    %c1_98 = arith.constant 1 : index
    %c0_99 = arith.constant 0 : index
    %c0_100 = arith.constant 0 : index
    %178 = vector.load %arg16[%c1_98, %c0_99, %c0_100] : memref<2x1x128xf32, #tpu.memory_space<vmem>>, vector<1x1x128xf32>
    %179 = vector.shape_cast %178 : vector<1x1x128xf32> to vector<1x128xf32>
    %cst_101 = arith.constant dense<0.000000e+00> : vector<16xf32>
    %180 = vector.multi_reduction <add>, %175, %cst_101 [1] : vector<16x128xf32> to vector<16xf32>
    %181 = vector.shape_cast %180 : vector<16xf32> to vector<16x1xf32>
    %cst_102 = arith.constant 3.125000e-02 : f32
    %182 = vector.broadcast %cst_102 : f32 to vector<16x1xf32>
    %183 = arith.mulf %181, %182 : vector<16x1xf32>
    %184 = arith.mulf %175, %175 : vector<16x128xf32>
    %cst_103 = arith.constant dense<0.000000e+00> : vector<16xf32>
    %185 = vector.multi_reduction <add>, %184, %cst_103 [1] : vector<16x128xf32> to vector<16xf32>
    %186 = vector.shape_cast %185 : vector<16xf32> to vector<16x1xf32>
    %cst_104 = arith.constant 3.125000e-02 : f32
    %187 = vector.broadcast %cst_104 : f32 to vector<16x1xf32>
    %188 = arith.mulf %186, %187 : vector<16x1xf32>
    %189 = arith.mulf %183, %183 : vector<16x1xf32>
    %190 = arith.subf %188, %189 : vector<16x1xf32>
    %191 = vector.broadcast %183 : vector<16x1xf32> to vector<16x128xf32>
    %192 = arith.subf %175, %191 : vector<16x128xf32>
    %cst_105 = arith.constant 9.99999974E-6 : f32
    %193 = vector.broadcast %cst_105 : f32 to vector<16x1xf32>
    %194 = arith.addf %190, %193 : vector<16x1xf32>
    %195 = math.rsqrt %194 : vector<16x1xf32>
    %196 = vector.broadcast %195 : vector<16x1xf32> to vector<16x128xf32>
    %197 = arith.mulf %192, %196 : vector<16x128xf32>
    %198 = vector.broadcast %177 : vector<1x128xf32> to vector<16x128xf32>
    %199 = arith.mulf %197, %198 : vector<16x128xf32>
    %200 = vector.broadcast %179 : vector<1x128xf32> to vector<16x128xf32>
    %201 = arith.addf %199, %200 : vector<16x128xf32>
    %c1_106 = arith.constant 1 : index
    %c0_107 = arith.constant 0 : index
    %c0_108 = arith.constant 0 : index
    %202 = vector.load %arg17[%c1_106, %c0_107, %c0_108] : memref<2x128x128xbf16, #tpu.memory_space<vmem>>, vector<1x128x128xbf16>
    %203 = vector.shape_cast %202 : vector<1x128x128xbf16> to vector<128x128xbf16>
    %204 = arith.truncf %201 : vector<16x128xf32> to vector<16x128xbf16>
    %cst_109 = arith.constant dense<0.000000e+00> : vector<16x128xf32>
    %205 = tpu.matmul %204, %203, %cst_109 {dimension_numbers = #tpu.dot_dimension_numbers<[1], [0], [0], [1], [0, 0, 1, 1], [], []>} : vector<16x128xbf16>, vector<128x128xbf16>, vector<16x128xf32> -> vector<16x128xf32>
    %c1_110 = arith.constant 1 : index
    %c0_111 = arith.constant 0 : index
    %c0_112 = arith.constant 0 : index
    %206 = vector.load %arg18[%c1_110, %c0_111, %c0_112] : memref<2x1x128xf32, #tpu.memory_space<vmem>>, vector<1x1x128xf32>
    %207 = vector.shape_cast %206 : vector<1x1x128xf32> to vector<1x128xf32>
    %208 = vector.broadcast %207 : vector<1x128xf32> to vector<16x128xf32>
    %209 = arith.addf %205, %208 : vector<16x128xf32>
    %c0_113 = arith.constant 0 : index
    %c0_114 = arith.constant 0 : index
    %210 = vector.load %arg19[%c0_113, %c0_114] : memref<16x128xf32, #tpu.memory_space<vmem>>, vector<16x128xf32>
    tpu.vector_store %arg19[%c0_113, %c0_114], %209 {strides = array<i32>} : memref<16x128xf32, #tpu.memory_space<vmem>>, vector<16x128xf32>,
    return
  }
  func.func @transform_0(%arg0: i32) -> (i32, i32) {
    %c0_i32 = arith.constant 0 : i32
    %c0_i32_0 = arith.constant 0 : i32
    return %arg0, %c0_i32 : i32, i32
  }
  func.func @transform_1(%arg0: i32) -> (i32, i32, i32) {
    %c0_i32 = arith.constant 0 : i32
    %c0_i32_0 = arith.constant 0 : i32
    %c0_i32_1 = arith.constant 0 : i32
    %c0_i32_2 = arith.constant 0 : i32
    return %c0_i32, %c0_i32_0, %c0_i32_1 : i32, i32, i32
  }
  func.func @transform_2(%arg0: i32) -> (i32, i32, i32) {
    %c0_i32 = arith.constant 0 : i32
    %c0_i32_0 = arith.constant 0 : i32
    %c0_i32_1 = arith.constant 0 : i32
    %c0_i32_2 = arith.constant 0 : i32
    return %c0_i32, %c0_i32_0, %c0_i32_1 : i32, i32, i32
  }
  func.func @transform_3(%arg0: i32) -> (i32, i32, i32) {
    %c0_i32 = arith.constant 0 : i32
    %c0_i32_0 = arith.constant 0 : i32
    %c0_i32_1 = arith.constant 0 : i32
    %c0_i32_2 = arith.constant 0 : i32
    return %c0_i32, %c0_i32_0, %c0_i32_1 : i32, i32, i32
  }
  func.func @transform_4(%arg0: i32) -> (i32, i32, i32) {
    %c0_i32 = arith.constant 0 : i32
    %c0_i32_0 = arith.constant 0 : i32
    %c0_i32_1 = arith.constant 0 : i32
    %c0_i32_2 = arith.constant 0 : i32
    return %c0_i32, %c0_i32_0, %c0_i32_1 : i32, i32, i32
  }
  func.func @transform_5(%arg0: i32) -> (i32, i32) {
    %c0_i32 = arith.constant 0 : i32
    %c0_i32_0 = arith.constant 0 : i32
    %c0_i32_1 = arith.constant 0 : i32
    return %c0_i32, %c0_i32_0 : i32, i32
  }
  func.func @transform_6(%arg0: i32) -> (i32, i32) {
    %c0_i32 = arith.constant 0 : i32
    %c0_i32_0 = arith.constant 0 : i32
    %c0_i32_1 = arith.constant 0 : i32
    return %c0_i32, %c0_i32_0 : i32, i32
  }
  func.func @transform_7(%arg0: i32) -> (i32, i32) {
    %c0_i32 = arith.constant 0 : i32
    %c0_i32_0 = arith.constant 0 : i32
    %c0_i32_1 = arith.constant 0 : i32
    return %c0_i32, %c0_i32_0 : i32, i32
  }
  func.func @transform_8(%arg0: i32) -> (i32, i32) {
    %c0_i32 = arith.constant 0 : i32
    %c0_i32_0 = arith.constant 0 : i32
    %c0_i32_1 = arith.constant 0 : i32
    return %c0_i32, %c0_i32_0 : i32, i32
  }
  func.func @transform_9(%arg0: i32) -> (i32, i32) {
    %c0_i32 = arith.constant 0 : i32
    %c0_i32_0 = arith.constant 0 : i32
    %c0_i32_1 = arith.constant 0 : i32
    return %c0_i32, %c0_i32_0 : i32, i32
  }
  func.func @transform_10(%arg0: i32) -> (i32, i32) {
    %c0_i32 = arith.constant 0 : i32
    %c0_i32_0 = arith.constant 0 : i32
    %c0_i32_1 = arith.constant 0 : i32
    return %c0_i32, %c0_i32_0 : i32, i32
  }
  func.func @transform_11(%arg0: i32) -> (i32, i32) {
    %c0_i32 = arith.constant 0 : i32
    %c0_i32_0 = arith.constant 0 : i32
    %c0_i32_1 = arith.constant 0 : i32
    return %c0_i32, %c0_i32_0 : i32, i32
  }
  func.func @transform_12(%arg0: i32) -> (i32, i32, i32) {
    %c0_i32 = arith.constant 0 : i32
    %c0_i32_0 = arith.constant 0 : i32
    %c0_i32_1 = arith.constant 0 : i32
    %c0_i32_2 = arith.constant 0 : i32
    return %c0_i32, %c0_i32_0, %c0_i32_1 : i32, i32, i32
  }
  func.func @transform_13(%arg0: i32) -> (i32, i32, i32) {
    %c0_i32 = arith.constant 0 : i32
    %c0_i32_0 = arith.constant 0 : i32
    %c0_i32_1 = arith.constant 0 : i32
    %c0_i32_2 = arith.constant 0 : i32
    return %c0_i32, %c0_i32_0, %c0_i32_1 : i32, i32, i32
  }
  func.func @transform_14(%arg0: i32) -> (i32, i32, i32) {
    %c0_i32 = arith.constant 0 : i32
    %c0_i32_0 = arith.constant 0 : i32
    %c0_i32_1 = arith.constant 0 : i32
    %c0_i32_2 = arith.constant 0 : i32
    return %c0_i32, %c0_i32_0, %c0_i32_1 : i32, i32, i32
  }
  func.func @transform_15(%arg0: i32) -> (i32, i32, i32) {
    %c0_i32 = arith.constant 0 : i32
    %c0_i32_0 = arith.constant 0 : i32
    %c0_i32_1 = arith.constant 0 : i32
    %c0_i32_2 = arith.constant 0 : i32
    return %c0_i32, %c0_i32_0, %c0_i32_1 : i32, i32, i32
  }
  func.func @transform_16(%arg0: i32) -> (i32, i32, i32) {
    %c0_i32 = arith.constant 0 : i32
    %c0_i32_0 = arith.constant 0 : i32
    %c0_i32_1 = arith.constant 0 : i32
    %c0_i32_2 = arith.constant 0 : i32
    return %c0_i32, %c0_i32_0, %c0_i32_1 : i32, i32, i32
  }
  func.func @transform_17(%arg0: i32) -> (i32, i32, i32) {
    %c0_i32 = arith.constant 0 : i32
    %c0_i32_0 = arith.constant 0 : i32
    %c0_i32_1 = arith.constant 0 : i32
    %c0_i32_2 = arith.constant 0 : i32
    return %c0_i32, %c0_i32_0, %c0_i32_1 : i32, i32, i32
  }
  func.func @transform_18(%arg0: i32) -> (i32, i32) {
    %c0_i32 = arith.constant 0 : i32
    %c0_i32_0 = arith.constant 0 : i32
    return %arg0, %c0_i32 : i32, i32
  }
  func.func @transform_19(%arg0: i32) -> (i32, i32) {
    %c0_i32 = arith.constant 0 : i32
    %c0_i32_0 = arith.constant 0 : i32
    return %arg0, %c0_i32 : i32, i32
  }
}

</mosaic_0001>

<bundles_post_ra>
// kernel: tpu_custom_call.1
= control target key start
LH: loop header
LB: loop body
LE: loop exit
PB: predicated region body
PF: predicated region fallthrough
CT: control target
= control target key end

     0   :  { %s2498_s0 = inlined_call_operand.hbm [shape: bf16[16,128], index: 0, kind: input, shape index: {}]   ;;  %s2499_s1 = inlined_call_operand.hbm [shape: bf16[2,128,128], index: 1, kind: input, shape index: {}]   ;;  %s2500_s2 = inlined_call_operand.hbm [shape: f32[2,1,128], index: 2, kind: input, shape index: {}]   ;;  %s2501_s3 = inlined_call_operand.vmem [shape: f32[2,1,128], index: 3, kind: input, shape index: {}]   ;;  %s2502_s4 = inlined_call_operand.hbm [shape: f32[2,1,128], index: 4, kind: input, shape index: {}]   ;;  %s2503_s5 = inlined_call_operand.hbm [shape: bf16[128,128], index: 5, kind: input, shape index: {}]   ;;  %s2504_s6 = inlined_call_operand.hbm [shape: f32[1,128], index: 6, kind: input, shape index: {}]   ;;  %s2505_s7 = inlined_call_operand.hbm [shape: f32[128,128], index: 7, kind: input, shape index: {}]   ;;  %s2506_s8 = inlined_call_operand.hbm [shape: bf16[128,128], index: 8, kind: input, shape index: {}]   ;;  %s2507_s9 = inlined_call_operand.hbm [shape: f32[1,128], index: 9, kind: input, shape index: {}]   ;;  %s2508_s10 = inlined_call_operand.hbm [shape: bf16[128,128], index: 10, kind: input, shape index: {}]   ;;  %s2509_s11 = inlined_call_operand.hbm [shape: f32[1,128], index: 11, kind: input, shape index: {}]   ;;  %s2510_s12 = inlined_call_operand.hbm [shape: bf16[2,128,128], index: 12, kind: input, shape index: {}]   ;;  %s2511_s13 = inlined_call_operand.vmem [shape: f32[2,1,128], index: 13, kind: input, shape index: {}]   ;;  %s2512_s14 = inlined_call_operand.vmem [shape: f32[2,1,128], index: 14, kind: input, shape index: {}]   ;;  %s2513_s15 = inlined_call_operand.vmem [shape: f32[2,1,128], index: 15, kind: input, shape index: {}]   ;;  %s2514_s16 = inlined_call_operand.hbm [shape: bf16[2,128,128], index: 16, kind: input, shape index: {}]   ;;  %s2515_s17 = inlined_call_operand.vmem [shape: f32[2,1,128], index: 17, kind: input, shape index: {}]   ;;  %s2516_s18 = inlined_call_operand.hbm [shape: f32[16,128], index: 18, kind: output, shape index: {0}]   ;;  %s2517_s19 = inlined_call_operand.hbm [shape: f32[1,1], index: 19, kind: output, shape index: {1}]  }
   0x1   :  { %2519 = sst [smem:[#allocation35_spill]] %s2498_s0 }
   0x2   :  { %2520 = sst [smem:[#allocation36_spill]] %s2499_s1 }
   0x3   :  { %2521 = sst [smem:[#allocation37_spill]] %s2500_s2 }
   0x4   :  { %2522 = sst [smem:[#allocation38_spill]] %s2501_s3 }
   0x5   :  { %25 = vsyncpa [#allocation3], 0 }
   0x6   :  { %26 = vsyncpa [#allocation7], 0 }
   0x7   :  { %27 = vsyncpa [#allocation10], 0 }
   0x8   :  { %28 = vsyncpa [#allocation13], 0 }
   0x9   :  { %29 = vsyncpa [#allocation16], 0 }
   0xa   :  { %30 = vsyncpa [#allocation19], 0 }
   0xb   :  { %31 = vsyncpa [#allocation22], 0 }
   0xc   :  { %32 = vsyncpa [#allocation4], 0 }
   0xd   :  { %33 = vsyncpa [#allocation5], 0  ;;  %s2523_s20 = sld [smem:[#allocation36_spill]]  ;;  %s2210_s1 = smov [#allocation6]  }
   0xe   :  { %s53_s22 = sshll.u32 %s2210_s1, 4  ;;  %s2211_s2 = smov 64   ;;  %s54_s22 = int_to_ptr.vmem [resolvable:$true] %s53_s22 }
   0xf   :  { %s2212_s23 = smov 4   ;;  %s79_s3 = sshll.u32 %s2502_s4, 4  ;;  %s80_s3 = int_to_ptr.hbm [resolvable:$true] %s79_s3 }
  0x10   :  { %s2213_s26 = smov [#allocation9]   ;;  %s106_s0 = sshll.u32 %s2504_s6, 4  ;;  %s107_s0 = int_to_ptr.hbm [resolvable:$true] %s106_s0 }
  0x11   :  { %s81_s27 = sshll.u32 %s2213_s26, 4  ;;  %s2214_s30 = smov 16   ;;  %s82_s27 = int_to_ptr.vmem [resolvable:$true] %s81_s27 }
  0x12   :  { %s2216_s4 = smov [#allocation12]   ;;  %s2217_s25 = smov [#allocation15]  }
  0x13   :  { %s51_s21 = sshll.u32 %s2523_s20, 4  ;;  %s2215_s20 = smov 1   ;;  %s52_s21 = int_to_ptr.hbm [resolvable:$true] %s51_s21 }
  0x14   :  { %59 = dma.hbm_to_vmem [thread:$0]  %s52_s21, 2048, %s54_s22, [#allocation7], %s2211_s2, %s2211_s2, %s2212_s23  }
  0x15   :  { %87 = dma.hbm_to_vmem [thread:$0]  %s80_s3, 32, %s82_s27, [#allocation10], %s2214_s30, %s2214_s30, %s2215_s20  }
  0x16   :  { %s129_s22 = sshll.u32 %s2506_s8, 4  ;;  %s108_s24 = sshll.u32 %s2216_s4, 4  ;;  %s130_s22 = int_to_ptr.hbm [resolvable:$true] %s129_s22  ;;  %s109_s24 = int_to_ptr.vmem [resolvable:$true] %s108_s24 }
  0x17   :  { %111 = dma.hbm_to_vmem [thread:$0]  %s107_s0, 16, %s109_s24, [#allocation13]  }
  0x18   :  { %s131_s26 = sshll.u32 %s2217_s25, 4  ;;  %s153_s29 = sshll.u32 %s2508_s10, 4  ;;  %s132_s26 = int_to_ptr.vmem [resolvable:$true] %s131_s26  ;;  %s154_s29 = int_to_ptr.hbm [resolvable:$true] %s153_s29 }
  0x19   :  { %137 = dma.hbm_to_vmem [thread:$0]  %s130_s22, 1024, %s132_s26, [#allocation16], %s2211_s2, %s2211_s2, %s2212_s23  }
  0x1a   :  { %s177_s8 = sshll.u32 %s2510_s12, 4  ;;  %s2218_s21 = smov [#allocation18]   ;;  %s178_s8 = int_to_ptr.hbm [resolvable:$true] %s177_s8 }
  0x1b   :  { %s155_s1 = sshll.u32 %s2218_s21, 4  ;;  %s2219_s0 = smov [#allocation21]   ;;  %s156_s1 = int_to_ptr.vmem [resolvable:$true] %s155_s1 }
  0x1c   :  { %161 = dma.hbm_to_vmem [thread:$0]  %s154_s29, 1024, %s156_s1, [#allocation19], %s2211_s2, %s2211_s2, %s2212_s23  }
  0x1d   :  { %s179_s10 = sshll.u32 %s2219_s0, 4  ;;  %s2524_s25 = sld [smem:[#allocation35_spill]]  ;;  %s180_s10 = int_to_ptr.vmem [resolvable:$true] %s179_s10 }
  0x1e   :  { %185 = dma.hbm_to_vmem [thread:$0]  %s178_s8, 2048, %s180_s10, [#allocation22], %s2211_s2, %s2211_s2, %s2212_s23  }
  0x1f   :  { %s2525_s26 = sld [smem:[#allocation37_spill]]  ;;  %s2220_s3 = smov [#allocation2]  }
  0x20   :  { %s40_s27 = sshll.u32 %s2220_s3, 4  ;;  %s2221_s29 = smov [#allocation8]   ;;  %s41_s27 = int_to_ptr.vmem [resolvable:$true] %s40_s27 }
  0x21   :  { %s66_s21 = sshll.u32 %s2221_s29, 4  ;;  %s92_s4 = sshll.u32 %s2503_s5, 4  ;;  %s67_s21 = int_to_ptr.vmem [resolvable:$true] %s66_s21  ;;  %s93_s4 = int_to_ptr.hbm [resolvable:$true] %s92_s4 }
  0x22   :  { %s116_s24 = sshll.u32 %s2505_s7, 4  ;;  %s2224_s22 = smov 128   ;;  %s117_s24 = int_to_ptr.hbm [resolvable:$true] %s116_s24 }
  0x23   :  { %s38_s6 = sshll.u32 %s2524_s25, 4  ;;  %s2222_s25 = smov [#allocation11]   ;;  %s39_s6 = int_to_ptr.hbm [resolvable:$true] %s38_s6 }
  0x24   :  { %46 = dma.hbm_to_vmem [thread:$0]  %s39_s6, 128, %s41_s27, [#allocation3], %s2211_s2, %s2211_s2, %s2212_s23  }
  0x25   :  { %s64_s28 = sshll.u32 %s2525_s26, 4  ;;  %s94_s12 = sshll.u32 %s2222_s25, 4  ;;  %s65_s28 = int_to_ptr.hbm [resolvable:$true] %s64_s28  ;;  %s95_s12 = int_to_ptr.vmem [resolvable:$true] %s94_s12 }
  0x26   :  { %72 = dma.hbm_to_vmem [thread:$0]  %s65_s28, 32, %s67_s21, [#allocation7], %s2214_s30, %s2214_s30, %s2215_s20  }
  0x27   :  { %100 = dma.hbm_to_vmem [thread:$0]  %s93_s4, 1024, %s95_s12, [#allocation10], %s2211_s2, %s2211_s2, %s2212_s23  }
  0x28   :  { %s2223_s6 = smov [#allocation14]   ;;  %s2225_s26 = smov 8  }
  0x29   :  { %s118_s5 = sshll.u32 %s2223_s6, 4  ;;  %s143_s7 = sshll.u32 %s2507_s9, 4  ;;  %s119_s5 = int_to_ptr.vmem [resolvable:$true] %s118_s5  ;;  %s144_s7 = int_to_ptr.hbm [resolvable:$true] %s143_s7 }
  0x2a   :  { %124 = dma.hbm_to_vmem [thread:$0]  %s117_s24, 2048, %s119_s5, [#allocation13], %s2224_s22, %s2224_s22, %s2225_s26  }
  0x2b   :  { %s2226_s28 = smov [#allocation17]   ;;  %s167_s21 = sshll.u32 %s2509_s11, 4  ;;  %s168_s21 = int_to_ptr.hbm [resolvable:$true] %s167_s21 }
  0x2c   :  { %s145_s3 = sshll.u32 %s2226_s28, 4  ;;  %s2227_s1 = smov [#allocation20]   ;;  %s146_s3 = int_to_ptr.vmem [resolvable:$true] %s145_s3 }
  0x2d   :  { %148 = dma.hbm_to_vmem [thread:$0]  %s144_s7, 16, %s146_s3, [#allocation16]  }
  0x2e   :  { %s169_s0 = sshll.u32 %s2227_s1, 4  ;;  %s196_s10 = sshll.u32 %s2514_s16, 4  ;;  %s170_s0 = int_to_ptr.vmem [resolvable:$true] %s169_s0  ;;  %s197_s10 = int_to_ptr.hbm [resolvable:$true] %s196_s10 }
  0x2f   :  { %172 = dma.hbm_to_vmem [thread:$0]  %s168_s21, 16, %s170_s0, [#allocation19]  }
  0x30   :  { %s2228_s9 = smov [#allocation23]  }
  0x31   :  { %s198_s24 = sshll.u32 %s2228_s9, 4  ;;  %s199_s24 = int_to_ptr.vmem [resolvable:$true] %s198_s24 }
  0x32   :  { %204 = dma.hbm_to_vmem [thread:$0]  %s197_s10, 2048, %s199_s24, [#allocation22], %s2211_s2, %s2211_s2, %s2212_s23  }
  0x33   :  { %2192 = dma.done.wait [#allocation3], 128  }
  0x34   :  { %2193 = vsyncadd [#allocation3], 4294967168 }
  0x35   :  { %2194 = dma.done.wait [#allocation7], 2080  }
  0x36   :  { %2195 = vsyncadd [#allocation7], 4294965216 }
  0x37   :  { %2196 = dma.done.wait [#allocation10], 1056  }
  0x38   :  { %2197 = vsyncadd [#allocation10], 4294966240 }
  0x39   :  { %2198 = dma.done.wait [#allocation13], 2064  }
  0x3a   :  { %2199 = vsyncadd [#allocation13], 4294965232 }
  0x3b   :  { %2200 = dma.done.wait [#allocation16], 1040  }
  0x3c   :  { %2201 = vsyncadd [#allocation16], 4294966256 }
  0x3d   :  { %2202 = dma.done.wait [#allocation19], 1040  }
  0x3e   :  { %2203 = vsyncadd [#allocation19], 4294966256 }
  0x3f   :  { %2204 = dma.done.wait [#allocation22], 4096  }
  0x40   :  { %2205 = vsyncadd [#allocation22], 4294963200  ;;  %v1722_v0 = vld [vmem:[#allocation6 + $0x38] sm:$0xff]  ;;  %v1721_v1 = vld [vmem:[#allocation6 + $0x30] sm:$0xff]  ;;  %s2526_s2 = sld [smem:[#allocation38_spill]]  ;;  %s2230_s9 = smov [#allocation25]  }
  0x41   :  { %335 = vmatpush.bf16.msra.mxu0 %v1722_v0  ;;  %v1720_v2 = vld [vmem:[#allocation6 + $0x28] sm:$0xff]  ;;  %v1719_v3 = vld [vmem:[#allocation6 + $0x20] sm:$0xff]  ;;  %v1718_v4 = vld [vmem:[#allocation6 + $0x18] sm:$0xff]  ;;  %s1379_s25 = sshll.u32 %s2516_s18, 4  ;;  %s1380_s25 = int_to_ptr.hbm [resolvable:$true] %s1379_s25 }
  0x42   :  { %v1717_v5 = vld [vmem:[#allocation6 + $0x10] sm:$0xff]  ;;  %v1716_v6 = vld [vmem:[#allocation6 + $0x8] sm:$0xff]  ;;  %v1715_v7 = vld [vmem:[#allocation6] sm:$0xff] }
  0x43   :  { %v1714_v8 = vld [vmem:[#allocation2] sm:$0xff]  ;;  %v1811_v9 = vld [vmem:[#allocation8] ss:$0 sm:$0xff]  ;;  %v1729_v19 = vld [vmem:[#allocation6 + $0x70] sm:$0xff] }
  0x44   :  { %v1730_v18 = vld [vmem:[#allocation6 + $0x78] sm:$0xff]  ;;  %v1728_v20 = vld [vmem:[#allocation6 + $0x68] sm:$0xff]  ;;  %v1727_v21 = vld [vmem:[#allocation6 + $0x60] sm:$0xff] }
  0x45   :  { %336 = vmatpush.bf16.msra.mxu0 %v1721_v1  ;;  %478 = vmatpush.bf16.msra.mxu1 %v1730_v18  ;;  %v1726_v22 = vld [vmem:[#allocation6 + $0x58] sm:$0xff]  ;;  %v1725_v23 = vld [vmem:[#allocation6 + $0x50] sm:$0xff]  ;;  %v1724_v25 = vld [vmem:[#allocation6 + $0x48] sm:$0xff] }
  0x46   :  { %v1723_v30 = vld [vmem:[#allocation6 + $0x40] sm:$0xff]  ;;  %v1812_v54 = vld [vmem:[%s2526_s2] ss:$0 sm:$0xff] }
  0x47   :  { %v1813_v60 = vld [vmem:[#allocation9] ss:$0 sm:$0xff]  ;;  %v1814_v1 = vld [vmem:[#allocation8 + $0x1] ss:$0 sm:$0xff] }
  0x49   :  { %337 = vmatpush.bf16.msra.mxu0 %v1720_v2  ;;  %479 = vmatpush.bf16.msra.mxu1 %v1729_v19 }
  0x4d   :  { %338 = vmatpush.bf16.msra.mxu0 %v1719_v3  ;;  %480 = vmatpush.bf16.msra.mxu1 %v1728_v20 }
  0x51   :  { %339 = vmatpush.bf16.msra.mxu0 %v1718_v4  ;;  %481 = vmatpush.bf16.msra.mxu1 %v1727_v21 }
  0x55   :  { %340 = vmatpush.bf16.msra.mxu0 %v1717_v5  ;;  %482 = vmatpush.bf16.msra.mxu1 %v1726_v22  ;;  %v1731_v22 = vld [vmem:[#allocation11] sm:$0xff] }
  0x59   :  { %341 = vmatpush.bf16.msra.mxu0 %v1716_v6  ;;  %483 = vmatpush.bf16.msra.mxu1 %v1725_v23 }
  0x5d   :  { %342 = vmatpush.bf16.msra.mxu0 %v1715_v7  ;;  %484 = vmatpush.bf16.msra.mxu1 %v1724_v25 }
  0x60   :  { %343 = vmatmul.bf16.vlgmr.msra.gmra.mxu0 %v1714_v8 }
  0x61   :  { %485 = vmatpush.bf16.msra.mxu1 %v1723_v30  ;;  %v1746_v30 = vld [vmem:[#allocation15 + $0x38] sm:$0xff] }
  0x62   :  { %700 = vmatpush.bf16.xpose.msra.mxu3 %v1746_v30  ;;  %v771_v30 = vld [vmem:[#allocation14 + $0x38] sm:$0xff] }
  0xdd   :  { %v344_v10 = vpop.f32.mrf.mxu0 }
  0xde   :  { %v345_v11 = vadd.f32 %v1811_v9, %v344_v10  ;;  %v1738_v10 = vld [vmem:[#allocation11 + $0x38] sm:$0xff] }
  0xdf   :  { %621 = vmatpush.bf16.msra.mxu2 %v1738_v10 }
  0xe0   :  { %v349_v12 = vmax.f32 %v345_v11, 0.0  ;;  %v1737_v11 = vld [vmem:[#allocation11 + $0x30] sm:$0xff] }
  0xe2   :  { %353 = vadd.xlane.f32.xlu0 %v349_v12  ;;  %v359_v13 = vmul.f32 %v349_v12, %v349_v12 }
  0xe3   :  { %622 = vmatpush.bf16.msra.mxu2 %v1737_v11 }
  0xe4   :  { %361 = vadd.xlane.f32.xlu1 %v359_v13  ;;  %v1735_v13 = vld [vmem:[#allocation11 + $0x20] sm:$0xff] }
  0xe5   :  { %v346_v14 = vpop.f32.mrf.mxu0 }
  0xe6   :  { %v347_v15 = vadd.f32 %v1811_v9, %v346_v14  ;;  %v1734_v14 = vld [vmem:[#allocation11 + $0x18] sm:$0xff] }
  0xe8   :  { %v350_v16 = vmax.f32 %v347_v15, 0.0  ;;  %v1733_v15 = vld [vmem:[#allocation11 + $0x10] sm:$0xff] }
  0xea   :  { %355 = vadd.xlane.f32.xlu0 %v350_v16  ;;  %v360_v17 = vmul.f32 %v350_v16, %v350_v16 }
  0xec   :  { %363 = vadd.xlane.f32.xlu1 %v360_v17  ;;  %v1732_v17 = vld [vmem:[#allocation11 + $0x8] sm:$0xff] }
 0x155   :  { %v354_v24 = vpop.xlane.xlu0 %353 }
 0x156   :  { %v357_v26 = vmul.f32 0.03125, %v354_v24 }
 0x157   :  { %v362_v27 = vpop.xlane.xlu1 %361 }
 0x158   :  { %v367_v28 = vmul.f32 %v357_v26, %v357_v26  ;;  %v365_v29 = vmul.f32 0.03125, %v362_v27  ;;  %v371_v51 = vsub.f32 %v349_v12, %v357_v26  ;;  %v1736_v12 = vld [vmem:[#allocation11 + $0x28] sm:$0xff] }
 0x159   :  { %623 = vmatpush.bf16.msra.mxu2 %v1736_v12  ;;  %v720_v12 = vlaneseq }
 0x15a   :  { %v369_v31 = vsub.f32 %v365_v29, %v367_v28 }
 0x15c   :  { %v373_v32 = vadd.f32 1e-05, %v369_v31 }
 0x15d   :  { %v356_v33 = vpop.xlane.xlu0 %355  ;;  %624 = vmatpush.bf16.msra.mxu2 %v1735_v13  ;;  %v2425_v13 = vand.u32 127, %v720_v12  ;;  %v1756_v12 = vld [vmem:[#allocation21 + $0x8] sm:$0xff] }
 0x15e   :  { %1828 = vrsqrt.f32 %v373_v32  ;;  %v358_v34 = vmul.f32 0.03125, %v356_v33  ;;  %vm381_vm1 = vweird.f32 %v373_v32 }
 0x15f   :  { %v364_v35 = vpop.xlane.xlu1 %363 }
 0x160   :  { %v368_v36 = vmul.f32 %v358_v34, %v358_v34  ;;  %v366_v37 = vmul.f32 0.03125, %v364_v35  ;;  %v372_v56 = vsub.f32 %v350_v16, %v358_v34  ;;  %v1745_v35 = vld [vmem:[#allocation15 + $0x30] sm:$0xff] }
 0x161   :  { %625 = vmatpush.bf16.msra.mxu2 %v1734_v14  ;;  %701 = vmatpush.bf16.xpose.msra.mxu3 %v1745_v35 }
 0x162   :  { %v370_v38 = vsub.f32 %v366_v37, %v368_v36 }
 0x164   :  { %v1829_v39 = vpop.eup %1828  ;;  %v374_v40 = vadd.f32 1e-05, %v370_v38 }
 0x165   :  { %v376_v41 = vmul.f32 %v1829_v39, %v373_v32  ;;  %vm382_vm0 = vweird.f32 %v1829_v39  ;;  %626 = vmatpush.bf16.msra.mxu2 %v1733_v15 }
 0x166   :  { %1830 = vrsqrt.f32 %v374_v40  ;;  %vm383_vm2 = vmor %vm381_vm1, %vm382_vm0  ;;  %vm391_vm4 = vweird.f32 %v374_v40 }
 0x167   :  { %v377_v42 = vmul.f32 %v1829_v39, %v376_v41 }
 0x169   :  { %v378_v43 = vmul.f32 0.5, %v377_v42  ;;  %627 = vmatpush.bf16.msra.mxu2 %v1732_v17  ;;  %v1744_v42 = vld [vmem:[#allocation15 + $0x28] sm:$0xff] }
 0x16a   :  { %702 = vmatpush.bf16.xpose.msra.mxu3 %v1744_v42 }
 0x16b   :  { %v379_v44 = vsub.f32 1.5, %v378_v43 }
 0x16c   :  { %v1831_v45 = vpop.eup %1830 }
 0x16d   :  { %v380_v46 = vmul.f32 %v1829_v39, %v379_v44  ;;  %v386_v47 = vmul.f32 %v1831_v45, %v374_v40  ;;  %vm392_vm3 = vweird.f32 %v1831_v45  ;;  %628 = vmatpush.bf16.msra.mxu2 %v1731_v22  ;;  %v779_v22 = vld [vmem:[#allocation14 + $0x78] sm:$0xff] }
 0x16e   :  { %vm393_vm5 = vmor %vm391_vm4, %vm392_vm3  ;;  %780 = vmatpush.msrb.mxu0 %v779_v22 }
 0x16f   :  { %v387_v48 = vmul.f32 %v1831_v45, %v386_v47  ;;  %v384_v50 = vsel %vm383_vm2, %v1829_v39, %v380_v46 }
 0x170   :  { %v395_v53 = vmul.f32 %v384_v50, %v371_v51 }
 0x171   :  { %v388_v49 = vmul.f32 0.5, %v387_v48 }
 0x172   :  { %v400_v59 = vmul.f32 %v1812_v54, %v395_v53 }
 0x173   :  { %v389_v52 = vsub.f32 1.5, %v388_v49  ;;  %v1815_v49 = vld [vmem:[%s2526_s2 + $0x1] ss:$0 sm:$0xff] }
 0x174   :  { %v405_v62 = vadd.f32 %v1813_v60, %v400_v59 }
 0x175   :  { %v390_v55 = vmul.f32 %v1831_v45, %v389_v52  ;;  %v1743_v52 = vld [vmem:[#allocation15 + $0x20] sm:$0xff] }
 0x176   :  { %703 = vmatpush.bf16.xpose.msra.mxu3 %v1743_v52 }
 0x177   :  { %v394_v57 = vsel %vm393_vm5, %v1831_v45, %v390_v55 }
 0x178   :  { %v396_v58 = vmul.f32 %v394_v57, %v372_v56  ;;  %v1816_v56 = vld [vmem:[#allocation9 + $0x1] ss:$0 sm:$0xff] }
 0x17a   :  { %v401_v61 = vmul.f32 %v1812_v54, %v396_v58 }
 0x17c   :  { %v406_v63 = vadd.f32 %v1813_v60, %v401_v61  ;;  %v1742_v61 = vld [vmem:[#allocation15 + $0x18] sm:$0xff] }
 0x17e   :  { %v424_v0 = vpack.c.bf16 %v406_v63, %v405_v62  ;;  %704 = vmatpush.bf16.xpose.msra.mxu3 %v1742_v61  ;;  %v1741_v62 = vld [vmem:[#allocation15 + $0x10] sm:$0xff]  ;;  %v1740_v63 = vld [vmem:[#allocation15 + $0x8] sm:$0xff] }
 0x180   :  { %486 = vmatmul.bf16.vlgmr.msra.gmra.mxu1 %v424_v0  ;;  %v1739_v0 = vld [vmem:[#allocation15] sm:$0xff] }
 0x186   :  { %705 = vmatpush.bf16.xpose.msra.mxu3 %v1741_v62  ;;  %v1749_v62 = vld [vmem:[#allocation18 + $0x10] sm:$0xff] }
 0x18e   :  { %706 = vmatpush.bf16.xpose.msra.mxu3 %v1740_v63  ;;  %v1748_v63 = vld [vmem:[#allocation18 + $0x8] sm:$0xff] }
 0x196   :  { %707 = vmatpush.bf16.xpose.msra.mxu3 %v1739_v0  ;;  %v1747_v0 = vld [vmem:[#allocation18] sm:$0xff] }
 0x1fd   :  { %v487_v2 = vpop.f32.mrf.mxu1 }
 0x1fe   :  { %v488_v3 = vadd.f32 %v1814_v1, %v487_v2  ;;  %v1817_v2 = vld [vmem:[#allocation12] ss:$0 sm:$0xff] }
 0x200   :  { %v2404_v4 = vmax.f32 %v488_v3, 0.0 }
 0x202   :  { %498 = vadd.xlane.f32.xlu2 %v2404_v4  ;;  %v504_v5 = vmul.f32 %v2404_v4, %v2404_v4 }
 0x204   :  { %506 = vadd.xlane.f32.xlu0 %v504_v5 }
 0x205   :  { %v489_v6 = vpop.f32.mrf.mxu1 }
 0x206   :  { %v490_v7 = vadd.f32 %v1814_v1, %v489_v6 }
 0x208   :  { %v2409_v8 = vmax.f32 %v490_v7, 0.0  ;;  %v1818_v7 = vld [vmem:[#allocation17] ss:$0 sm:$0xff] }
 0x20a   :  { %500 = vadd.xlane.f32.xlu2 %v2409_v8  ;;  %v505_v9 = vmul.f32 %v2409_v8, %v2409_v8 }
 0x20c   :  { %508 = vadd.xlane.f32.xlu1 %v505_v9 }
 0x275   :  { %v499_v16 = vpop.xlane.xlu2 %498 }
 0x276   :  { %v502_v18 = vmul.f32 0.03125, %v499_v16 }
 0x277   :  { %v507_v19 = vpop.xlane.xlu0 %506 }
 0x278   :  { %v512_v20 = vmul.f32 %v502_v18, %v502_v18  ;;  %v510_v21 = vmul.f32 0.03125, %v507_v19  ;;  %v516_v46 = vsub.f32 %v2404_v4, %v502_v18 }
 0x27a   :  { %v514_v23 = vsub.f32 %v510_v21, %v512_v20 }
 0x27c   :  { %v518_v24 = vadd.f32 1e-05, %v514_v23  ;;  %v778_v23 = vld [vmem:[#allocation14 + $0x70] sm:$0xff] }
 0x27d   :  { %v501_v25 = vpop.xlane.xlu2 %500  ;;  %781 = vmatpush.msrb.mxu0 %v778_v23 }
 0x27e   :  { %1832 = vrsqrt.f32 %v518_v24  ;;  %v503_v26 = vmul.f32 0.03125, %v501_v25  ;;  %vm526_vm7 = vweird.f32 %v518_v24  ;;  %v776_v25 = vld [vmem:[#allocation14 + $0x60] sm:$0xff] }
 0x27f   :  { %v509_v27 = vpop.xlane.xlu1 %508 }
 0x280   :  { %v513_v28 = vmul.f32 %v503_v26, %v503_v26  ;;  %v511_v29 = vmul.f32 0.03125, %v509_v27  ;;  %v517_v51 = vsub.f32 %v2409_v8, %v503_v26  ;;  %v775_v26 = vld [vmem:[#allocation14 + $0x58] sm:$0xff]  ;;  %v774_v27 = vld [vmem:[#allocation14 + $0x50] sm:$0xff] }
 0x282   :  { %v515_v31 = vsub.f32 %v511_v29, %v513_v28  ;;  %v773_v28 = vld [vmem:[#allocation14 + $0x48] sm:$0xff]  ;;  %v772_v29 = vld [vmem:[#allocation14 + $0x40] sm:$0xff] }
 0x284   :  { %v1833_v32 = vpop.eup %1832  ;;  %v519_v33 = vadd.f32 1e-05, %v515_v31  ;;  %v770_v31 = vld [vmem:[#allocation14 + $0x30] sm:$0xff] }
 0x285   :  { %v521_v34 = vmul.f32 %v1833_v32, %v518_v24  ;;  %vm527_vm6 = vweird.f32 %v1833_v32  ;;  %v777_v24 = vld [vmem:[#allocation14 + $0x68] sm:$0xff] }
 0x286   :  { %1834 = vrsqrt.f32 %v519_v33  ;;  %vm528_vm8 = vmor %vm526_vm7, %vm527_vm6  ;;  %vm536_vm10 = vweird.f32 %v519_v33  ;;  %782 = vmatpush.msrb.mxu0 %v777_v24 }
 0x287   :  { %v522_v36 = vmul.f32 %v1833_v32, %v521_v34  ;;  %v768_v34 = vld [vmem:[#allocation14 + $0x20] sm:$0xff] }
 0x288   :  { %783 = vmatpush.msrb.mxu0 %v776_v25 }
 0x289   :  { %v523_v37 = vmul.f32 0.5, %v522_v36 }
 0x28a   :  { %784 = vmatpush.msrb.mxu0 %v775_v26 }
 0x28b   :  { %v524_v38 = vsub.f32 1.5, %v523_v37  ;;  %v767_v37 = vld [vmem:[#allocation14 + $0x18] sm:$0xff] }
 0x28c   :  { %v1835_v39 = vpop.eup %1834  ;;  %785 = vmatpush.msrb.mxu0 %v774_v27 }
 0x28d   :  { %v525_v40 = vmul.f32 %v1833_v32, %v524_v38  ;;  %v531_v41 = vmul.f32 %v1835_v39, %v519_v33  ;;  %vm537_vm9 = vweird.f32 %v1835_v39  ;;  %v769_v33 = vld [vmem:[#allocation14 + $0x28] sm:$0xff] }
 0x28e   :  { %vm538_vm11 = vmor %vm536_vm10, %vm537_vm9  ;;  %786 = vmatpush.msrb.mxu0 %v773_v28 }
 0x28f   :  { %v532_v43 = vmul.f32 %v1835_v39, %v531_v41  ;;  %v529_v45 = vsel %vm528_vm8, %v1833_v32, %v525_v40 }
 0x290   :  { %v540_v48 = vmul.f32 %v529_v45, %v516_v46  ;;  %787 = vmatpush.msrb.mxu0 %v772_v29  ;;  %v764_v45 = vld [vmem:[#allocation14] sm:$0xff] }
 0x291   :  { %v533_v44 = vmul.f32 0.5, %v532_v43  ;;  %v766_v43 = vld [vmem:[#allocation14 + $0x10] sm:$0xff]  ;;  %v1754_v46 = vld [vmem:[#allocation18 + $0x38] sm:$0xff] }
 0x292   :  { %v545_v55 = vmul.f32 %v1815_v49, %v540_v48  ;;  %788 = vmatpush.msrb.mxu0 %v771_v30  ;;  %903 = vmatpush.bf16.msrb.mxu1 %v1754_v46  ;;  %v1752_v48 = vld [vmem:[#allocation18 + $0x28] sm:$0xff]  ;;  %v1770_v29 = vld [vmem:[#allocation23 + $0x38] sm:$0xff]  ;;  %v1769_v30 = vld [vmem:[#allocation23 + $0x30] sm:$0xff] }
 0x293   :  { %v534_v47 = vsub.f32 1.5, %v533_v44  ;;  %v765_v44 = vld [vmem:[#allocation14 + $0x8] sm:$0xff] }
 0x294   :  { %v550_v58 = vadd.f32 %v1816_v56, %v545_v55  ;;  %789 = vmatpush.msrb.mxu0 %v770_v31  ;;  %v1768_v31 = vld [vmem:[#allocation23 + $0x28] sm:$0xff] }
 0x295   :  { %v535_v50 = vmul.f32 %v1835_v39, %v534_v47  ;;  %v1753_v47 = vld [vmem:[#allocation18 + $0x30] sm:$0xff] }
 0x296   :  { %790 = vmatpush.msrb.mxu0 %v769_v33  ;;  %904 = vmatpush.bf16.msrb.mxu1 %v1753_v47  ;;  %v1766_v33 = vld [vmem:[#allocation23 + $0x18] sm:$0xff] }
 0x297   :  { %v539_v53 = vsel %vm538_vm11, %v1835_v39, %v535_v50  ;;  %v1750_v50 = vld [vmem:[#allocation18 + $0x18] sm:$0xff] }
 0x298   :  { %v541_v54 = vmul.f32 %v539_v53, %v517_v51  ;;  %791 = vmatpush.msrb.mxu0 %v768_v34  ;;  %v1765_v34 = vld [vmem:[#allocation23 + $0x10] sm:$0xff] }
 0x29a   :  { %v546_v57 = vmul.f32 %v1815_v49, %v541_v54  ;;  %792 = vmatpush.msrb.mxu0 %v767_v37  ;;  %905 = vmatpush.bf16.msrb.mxu1 %v1752_v48  ;;  %v1751_v49 = vld [vmem:[#allocation18 + $0x20] sm:$0xff] }
 0x29c   :  { %v551_v59 = vadd.f32 %v1816_v56, %v546_v57  ;;  %793 = vmatpush.msrb.mxu0 %v766_v43  ;;  %v2229_v57 = vmov 1.0  }
 0x29e   :  { %v568_v60 = vpack.c.bf16 %v551_v59, %v550_v58  ;;  %794 = vmatpush.msrb.mxu0 %v765_v44  ;;  %906 = vmatpush.bf16.msrb.mxu1 %v1751_v49  ;;  %v1778_v49 = vld [vmem:[#allocation21 + $0x78] sm:$0xff] }
 0x2a0   :  { %629 = vmatmul.bf16.vlgmr.msra.gmra.mxu2 %v568_v60  ;;  %795 = vmatpush.msrb.mxu0 %v764_v45 }
 0x2a2   :  { %907 = vmatpush.bf16.msrb.mxu1 %v1750_v50  ;;  %1127 = vmatpush.bf16.msra.mxu0 %v1770_v29 }
 0x2a6   :  { %908 = vmatpush.bf16.msrb.mxu1 %v1749_v62  ;;  %1128 = vmatpush.bf16.msra.mxu0 %v1769_v30  ;;  %v1824_v30 = vld [vmem:[%s2511_s13 + $0x1] ss:$0 sm:$0xff] }
 0x2aa   :  { %909 = vmatpush.bf16.msrb.mxu1 %v1748_v63  ;;  %1129 = vmatpush.bf16.msra.mxu0 %v1768_v31  ;;  %v1774_v63 = vld [vmem:[#allocation21 + $0x58] sm:$0xff] }
 0x2ae   :  { %910 = vmatpush.bf16.msrb.mxu1 %v1747_v0 }
 0x2b2   :  { %1212 = vmatpush.bf16.msra.mxu1 %v1778_v49  ;;  %v1780_v49 = vld [vmem:[#allocation23 + $0x48] sm:$0xff] }
 0x323   :  { %v630_v1 = vpop.f32.mrf.mxu2 }
 0x324   :  { %v2419_v4 = vadd.f32 %v1817_v2, %v630_v1  ;;  %v1762_v1 = vld [vmem:[#allocation21 + $0x38] sm:$0xff] }
 0x325   :  { %986 = vmatpush.bf16.msrb.mxu2 %v1762_v1 }
 0x32b   :  { %v632_v3 = vpop.f32.mrf.mxu2 }
 0x32c   :  { %v2421_v5 = vadd.f32 %v1817_v2, %v632_v3  ;;  %v1761_v2 = vld [vmem:[#allocation21 + $0x30] sm:$0xff]  ;;  %v1760_v3 = vld [vmem:[#allocation21 + $0x28] sm:$0xff] }
 0x32d   :  { %987 = vmatpush.bf16.msrb.mxu2 %v1761_v2 }
 0x32e   :  { %v651_v6 = vpack.c.bf16 %v2421_v5, %v2419_v4 }
 0x330   :  { %708 = vmatmul.bf16.vlgmr.msra.gmra.mxu3 %v651_v6  ;;  %v1759_v6 = vld [vmem:[#allocation21 + $0x20] sm:$0xff] }
 0x331   :  { %988 = vmatpush.bf16.msrb.mxu2 %v1760_v3 }
 0x335   :  { %989 = vmatpush.bf16.msrb.mxu2 %v1759_v6 }
 0x3b3   :  { %v709_v8 = vpop.f32.mrf.mxu3 }
 0x3b4   :  { %v718_v9 = vsub.f32 %v1818_v7, %v709_v8 }
 0x3b6   :  { %722 = vmin.xlane.f32.xlu2 %v718_v9 }
 0x3bb   :  { %v711_v10 = vpop.f32.mrf.mxu3 }
 0x3bc   :  { %v719_v11 = vsub.f32 %v1818_v7, %v711_v10  ;;  %v1758_v7 = vld [vmem:[#allocation21 + $0x18] sm:$0xff] }
 0x3bd   :  { %990 = vmatpush.bf16.msrb.mxu2 %v1758_v7 }
 0x3be   :  { %724 = vmin.xlane.f32.xlu0 %v719_v11 }
 0x429   :  { %v723_v14 = vpop.xlane.xlu2 %722 }
 0x42a   :  { %vm726_vm12 = vcmp.le.f32.partialorder %v718_v9, %v723_v14 }
 0x42b   :  { %v728_v15 = vsel %vm726_vm12, %v2425_v13, 128 }
 0x42c   :  { %v731_v16 = vshra.s32 %v728_v15, 16  ;;  %v730_v32 = vand.u32 65535, %v728_v15  ;;  %v1819_v15 = vld [vmem:[#allocation20] ss:$0 sm:$0xff] }
 0x42e   :  { %v733_v17 = vcvt.s32.f32 %v731_v16  ;;  %v732_v36 = vcvt.s32.f32 %v730_v32  ;;  %v1767_v32 = vld [vmem:[#allocation23 + $0x20] sm:$0xff] }
 0x42f   :  { %1130 = vmatpush.bf16.msra.mxu0 %v1767_v32 }
 0x430   :  { %734 = vmin.xlane.f32.xlu1 %v733_v17 }
 0x431   :  { %v725_v18 = vpop.xlane.xlu0 %724 }
 0x432   :  { %vm727_vm13 = vcmp.le.f32.partialorder %v719_v11, %v725_v18  ;;  %v1757_v11 = vld [vmem:[#allocation21 + $0x10] sm:$0xff] }
 0x433   :  { %v729_v19 = vsel %vm727_vm13, %v2425_v13, 128  ;;  %991 = vmatpush.bf16.msrb.mxu2 %v1757_v11  ;;  %1131 = vmatpush.bf16.msra.mxu0 %v1766_v33 }
 0x434   :  { %v745_v20 = vshra.s32 %v729_v19, 16  ;;  %v744_v39 = vand.u32 65535, %v729_v19 }
 0x436   :  { %v747_v21 = vcvt.s32.f32 %v745_v20  ;;  %v746_v41 = vcvt.s32.f32 %v744_v39  ;;  %v1820_v20 = vld [vmem:[%s2511_s13] ss:$0 sm:$0xff] }
 0x437   :  { %992 = vmatpush.bf16.msrb.mxu2 %v1756_v12  ;;  %1132 = vmatpush.bf16.msra.mxu0 %v1765_v34 }
 0x438   :  { %748 = vmin.xlane.f32.xlu2 %v747_v21 }
 0x4a3   :  { %v735_v35 = vpop.xlane.xlu1 %734 }
 0x4a4   :  { %vm736_vm14 = vcmp.eq.f32.partialorder %v733_v17, %v735_v35  ;;  %v741_v51 = vcvt.f32.s32 %v735_v35 }
 0x4a5   :  { %v737_v38 = vsel %vm736_vm14, %v732_v36, inf }
 0x4a6   :  { %738 = vmin.xlane.f32.xlu0 %v737_v38  ;;  %v742_v53 = vshll.u32 %v741_v51, 16  ;;  %v1764_v38 = vld [vmem:[#allocation23 + $0x8] sm:$0xff]  ;;  %v1777_v51 = vld [vmem:[#allocation21 + $0x70] sm:$0xff] }
 0x4a7   :  { %1133 = vmatpush.bf16.msra.mxu0 %v1764_v38  ;;  %1213 = vmatpush.bf16.msra.mxu1 %v1777_v51 }
 0x4ab   :  { %v749_v40 = vpop.xlane.xlu2 %748 }
 0x4ac   :  { %vm750_vm15 = vcmp.eq.f32.partialorder %v747_v21, %v749_v40  ;;  %v755_v56 = vcvt.f32.s32 %v749_v40 }
 0x4ad   :  { %v751_v42 = vsel %vm750_vm15, %v746_v41, inf  ;;  %v1763_v41 = vld [vmem:[#allocation23] sm:$0xff] }
 0x4ae   :  { %752 = vmin.xlane.f32.xlu1 %v751_v42  ;;  %v756_v59 = vshll.u32 %v755_v56, 16  ;;  %1134 = vmatpush.bf16.msra.mxu0 %v1763_v41 }
 0x519   :  { %v739_v52 = vpop.xlane.xlu0 %738 }
 0x51a   :  { %v740_v54 = vcvt.f32.s32 %v739_v52 }
 0x51c   :  { %v743_v55 = vadd.s32 %v742_v53, %v740_v54 }
 0x51e   :  { %vm758_vm0 = vcmp.eq.s32.totalorder %v2425_v13, %v743_v55  ;;  %v1776_v55 = vld [vmem:[#allocation21 + $0x68] sm:$0xff] }
 0x51f   :  { %1548 = vmatmul.msk.f32.vlgmr.msrb.gmra.mxu0 %vm758_vm0, %v2229_v57  ;;  %1214 = vmatpush.bf16.msra.mxu1 %v1776_v55 }
 0x521   :  { %v753_v58 = vpop.xlane.xlu1 %752 }
 0x522   :  { %v754_v60 = vcvt.f32.s32 %v753_v58  ;;  %v1775_v58 = vld [vmem:[#allocation21 + $0x60] sm:$0xff] }
 0x523   :  { %1215 = vmatpush.bf16.msra.mxu1 %v1775_v58 }
 0x524   :  { %v757_v61 = vadd.s32 %v756_v59, %v754_v60 }
 0x526   :  { %vm759_vm1 = vcmp.eq.s32.totalorder %v2425_v13, %v757_v61  ;;  %v1755_v13 = vld [vmem:[#allocation21] sm:$0xff] }
 0x527   :  { %1549 = vmatmul.msk.f32.gmra.mxu0 %vm759_vm1, %v2229_v57  ;;  %993 = vmatpush.bf16.msrb.mxu2 %v1755_v13 }
 0x528   :  { %1216 = vmatpush.bf16.msra.mxu1 %v1774_v63 }
 0x59c   :  { %v2431_v8 = vpop.f32.mrf.mxu0 }
 0x5a4   :  { %v2433_v9 = vpop.f32.mrf.mxu0 }
 0x5a5   :  { %v850_v10 = vpack.c.bf16 %v2433_v9, %v2431_v8 }
 0x5a7   :  { %911 = vmatmul.bf16.vlgmr.msrb.gmra.mxu1 %v850_v10  ;;  %v1821_v10 = vld [vmem:[%s2512_s14] ss:$0 sm:$0xff] }
 0x624   :  { %v912_v14 = vpop.f32.mrf.mxu1 }
 0x625   :  { %v913_v17 = vadd.f32 %v1819_v15, %v912_v14 }
 0x62c   :  { %v914_v16 = vpop.f32.mrf.mxu1 }
 0x62d   :  { %v915_v18 = vadd.f32 %v1819_v15, %v914_v16  ;;  %v1822_v16 = vld [vmem:[%s2513_s15] ss:$0 sm:$0xff] }
 0x62f   :  { %v933_v19 = vpack.c.bf16 %v915_v18, %v913_v17 }
 0x631   :  { %994 = vmatmul.bf16.vlgmr.msrb.gmra.mxu2 %v933_v19 }
 0x6b4   :  { %v995_v21 = vpop.f32.mrf.mxu2 }
 0x6b5   :  { %v996_v22 = vadd.f32 %v1820_v20, %v995_v21  ;;  %v1773_v21 = vld [vmem:[#allocation21 + $0x50] sm:$0xff] }
 0x6b6   :  { %1217 = vmatpush.bf16.msra.mxu1 %v1773_v21 }
 0x6b7   :  { %v2440_v23 = vmax.f32 %v996_v22, 0.0  ;;  %v1772_v22 = vld [vmem:[#allocation21 + $0x48] sm:$0xff] }
 0x6b9   :  { %1004 = vadd.xlane.f32.xlu2 %v2440_v23  ;;  %v1010_v24 = vmul.f32 %v2440_v23, %v2440_v23 }
 0x6ba   :  { %1218 = vmatpush.bf16.msra.mxu1 %v1772_v22 }
 0x6bb   :  { %1012 = vadd.xlane.f32.xlu1 %v1010_v24 }
 0x6bc   :  { %v997_v25 = vpop.f32.mrf.mxu2 }
 0x6bd   :  { %v998_v26 = vadd.f32 %v1820_v20, %v997_v25  ;;  %v1823_v25 = vld [vmem:[%s2515_s17] ss:$0 sm:$0xff] }
 0x6bf   :  { %v2445_v27 = vmax.f32 %v998_v26, 0.0 }
 0x6c1   :  { %1006 = vadd.xlane.f32.xlu0 %v2445_v27  ;;  %v1011_v28 = vmul.f32 %v2445_v27, %v2445_v27 }
 0x6c3   :  { %1014 = vadd.xlane.f32.xlu2 %v1011_v28 }
 0x72c   :  { %v1005_v35 = vpop.xlane.xlu2 %1004 }
 0x72d   :  { %v1008_v36 = vmul.f32 0.03125, %v1005_v35 }
 0x72e   :  { %v1013_v37 = vpop.xlane.xlu1 %1012 }
 0x72f   :  { %v1018_v39 = vmul.f32 %v1008_v36, %v1008_v36  ;;  %v1016_v40 = vmul.f32 0.03125, %v1013_v37  ;;  %v1022_v3 = vsub.f32 %v2440_v23, %v1008_v36  ;;  %v1771_v23 = vld [vmem:[#allocation21 + $0x40] sm:$0xff]  ;;  %v817_v37 = vsub.f32 %v2433_v9, %v2421_v5  ;;  %v1784_v5 = vld [vmem:[#allocation23 + $0x68] sm:$0xff] }
 0x730   :  { %1219 = vmatpush.bf16.msra.mxu1 %v1771_v23  ;;  %v1783_v9 = vld [vmem:[#allocation23 + $0x60] sm:$0xff]  ;;  %v1825_v23 = vld [vmem:[%s2512_s14 + $0x1] ss:$0 sm:$0xff]  ;;  %s1391_s14 = sshll.u32 %s2517_s19, 4  ;;  %s1392_s14 = int_to_ptr.hbm [resolvable:$true] %s1391_s14 }
 0x731   :  { %v1020_v42 = vsub.f32 %v1016_v40, %v1018_v39  ;;  %v816_v39 = vsub.f32 %v2431_v8, %v2419_v4  ;;  %v821_v41 = vmul.f32 %v817_v37, %v817_v37  ;;  %v1781_v4 = vld [vmem:[#allocation23 + $0x50] sm:$0xff] }
 0x733   :  { %v1024_v43 = vadd.f32 1e-05, %v1020_v42  ;;  %v820_v42 = vmul.f32 %v816_v39, %v816_v39 }
 0x734   :  { %v1007_v44 = vpop.xlane.xlu0 %1006 }
 0x735   :  { %1836 = vrsqrt.f32 %v1024_v43  ;;  %v1009_v45 = vmul.f32 0.03125, %v1007_v44  ;;  %vm1032_vm3 = vweird.f32 %v1024_v43  ;;  %v1786_v44 = vld [vmem:[#allocation23 + $0x78] sm:$0xff] }
 0x736   :  { %v1015_v46 = vpop.xlane.xlu2 %1014  ;;  %1357 = vmatpush.bf16.msra.mxu2 %v1786_v44 }
 0x737   :  { %v1019_v47 = vmul.f32 %v1009_v45, %v1009_v45  ;;  %v1017_v48 = vmul.f32 0.03125, %v1015_v46  ;;  %v1023_v12 = vsub.f32 %v2445_v27, %v1009_v45  ;;  %v1785_v45 = vld [vmem:[#allocation23 + $0x70] sm:$0xff]  ;;  %v1782_v46 = vld [vmem:[#allocation23 + $0x58] sm:$0xff] }
 0x739   :  { %v1021_v50 = vsub.f32 %v1017_v48, %v1019_v47 }
 0x73a   :  { %1358 = vmatpush.bf16.msra.mxu2 %v1785_v45 }
 0x73b   :  { %v1837_v52 = vpop.eup %1836  ;;  %v1025_v53 = vadd.f32 1e-05, %v1021_v50 }
 0x73c   :  { %v1027_v54 = vmul.f32 %v1837_v52, %v1024_v43  ;;  %vm1033_vm2 = vweird.f32 %v1837_v52  ;;  %v822_v43 = vadd.f32 %v821_v41, %v820_v42 }
 0x73d   :  { %1838 = vrsqrt.f32 %v1025_v53  ;;  %vm1034_vm4 = vmor %vm1032_vm3, %vm1033_vm2  ;;  %vm1042_vm6 = vweird.f32 %v1025_v53 }
 0x73e   :  { %v1028_v56 = vmul.f32 %v1837_v52, %v1027_v54  ;;  %1359 = vmatpush.bf16.msra.mxu2 %v1784_v5 }
 0x740   :  { %v1029_v57 = vmul.f32 0.5, %v1028_v56 }
 0x742   :  { %v1030_v59 = vsub.f32 1.5, %v1029_v57  ;;  %1360 = vmatpush.bf16.msra.mxu2 %v1783_v9 }
 0x743   :  { %v1839_v60 = vpop.eup %1838 }
 0x744   :  { %v1031_v61 = vmul.f32 %v1837_v52, %v1030_v59  ;;  %v1037_v62 = vmul.f32 %v1839_v60, %v1025_v53  ;;  %vm1043_vm5 = vweird.f32 %v1839_v60 }
 0x745   :  { %vm1044_vm7 = vmor %vm1042_vm6, %vm1043_vm5 }
 0x746   :  { %v1038_v0 = vmul.f32 %v1839_v60, %v1037_v62  ;;  %v1035_v1 = vsel %vm1034_vm4, %v1837_v52, %v1031_v61  ;;  %1361 = vmatpush.bf16.msra.mxu2 %v1782_v46  ;;  %v1779_v52 = vld [vmem:[#allocation23 + $0x40] sm:$0xff] }
 0x747   :  { %v1046_v7 = vmul.f32 %v1035_v1, %v1022_v3 }
 0x748   :  { %v1039_v2 = vmul.f32 0.5, %v1038_v0 }
 0x749   :  { %v1051_v15 = vmul.f32 %v1821_v10, %v1046_v7 }
 0x74a   :  { %v1040_v6 = vsub.f32 1.5, %v1039_v2  ;;  %1362 = vmatpush.bf16.msra.mxu2 %v1781_v4 }
 0x74b   :  { %v1056_v18 = vadd.f32 %v1822_v16, %v1051_v15 }
 0x74c   :  { %v1041_v11 = vmul.f32 %v1839_v60, %v1040_v6 }
 0x74e   :  { %v1045_v13 = vsel %vm1044_vm7, %v1839_v60, %v1041_v11  ;;  %1363 = vmatpush.bf16.msra.mxu2 %v1780_v49 }
 0x74f   :  { %v1047_v14 = vmul.f32 %v1045_v13, %v1023_v12 }
 0x751   :  { %v1052_v17 = vmul.f32 %v1821_v10, %v1047_v14 }
 0x752   :  { %1364 = vmatpush.bf16.msra.mxu2 %v1779_v52 }
 0x753   :  { %v1057_v19 = vadd.f32 %v1822_v16, %v1052_v17 }
 0x755   :  { %v1074_v20 = vpack.c.bf16 %v1057_v19, %v1056_v18 }
 0x757   :  { %1135 = vmatmul.bf16.vlgmr.msra.gmra.mxu0 %v1074_v20 }
 0x7d4   :  { %v1136_v24 = vpop.f32.mrf.mxu0 }
 0x7d5   :  { %v1137_v27 = vadd.f32 %v1823_v25, %v1136_v24 }
 0x7dc   :  { %v1138_v26 = vpop.f32.mrf.mxu0 }
 0x7dd   :  { %v1139_v28 = vadd.f32 %v1823_v25, %v1138_v26 }
 0x7df   :  { %v1158_v29 = vpack.c.bf16 %v1139_v28, %v1137_v27 }
 0x7e1   :  { %1220 = vmatmul.bf16.vlgmr.msra.gmra.mxu1 %v1158_v29  ;;  %v1826_v29 = vld [vmem:[%s2513_s15 + $0x1] ss:$0 sm:$0xff]  ;;  %s2231_s15 = smov [#allocation24]  }
 0x7e2   :  { %s1377_s16 = sshll.u32 %s2231_s15, 4  ;;  %s1378_s16 = int_to_ptr.vmem [resolvable:$true] %s1377_s16 }
 0x85e   :  { %v1221_v31 = vpop.f32.mrf.mxu1 }
 0x85f   :  { %v1222_v32 = vadd.f32 %v1824_v30, %v1221_v31 }
 0x861   :  { %v2464_v33 = vmax.f32 %v1222_v32, 0.0 }
 0x863   :  { %1232 = vadd.xlane.f32.xlu0 %v2464_v33  ;;  %v1238_v34 = vmul.f32 %v2464_v33, %v2464_v33 }
 0x865   :  { %1240 = vadd.xlane.f32.xlu2 %v1238_v34  ;;  %v1827_v34 = vld [vmem:[%s2515_s17 + $0x1] ss:$0 sm:$0xff] }
 0x866   :  { %v1223_v35 = vpop.f32.mrf.mxu1 }
 0x867   :  { %v1224_v36 = vadd.f32 %v1824_v30, %v1223_v35 }
 0x869   :  { %v2471_v38 = vmax.f32 %v1224_v36, 0.0 }
 0x86b   :  { %1234 = vadd.xlane.f32.xlu1 %v2471_v38  ;;  %v1239_v40 = vmul.f32 %v2471_v38, %v2471_v38 }
 0x86d   :  { %1242 = vadd.xlane.f32.xlu0 %v1239_v40 }
 0x873   :  { %823 = vadd.xlane.f32.xlu1 %v822_v43 }
 0x8d6   :  { %v1233_v8 = vpop.xlane.xlu0 %1232 }
 0x8d7   :  { %v1236_v47 = vmul.f32 0.03125, %v1233_v8 }
 0x8d8   :  { %v1241_v48 = vpop.xlane.xlu2 %1240 }
 0x8d9   :  { %v1246_v50 = vmul.f32 %v1236_v47, %v1236_v47  ;;  %v1244_v51 = vmul.f32 0.03125, %v1241_v48  ;;  %v1250_v20 = vsub.f32 %v2464_v33, %v1236_v47 }
 0x8db   :  { %v1248_v53 = vsub.f32 %v1244_v51, %v1246_v50 }
 0x8dd   :  { %v1252_v54 = vadd.f32 1e-05, %v1248_v53 }
 0x8de   :  { %v1235_v55 = vpop.xlane.xlu1 %1234 }
 0x8df   :  { %1840 = vrsqrt.f32 %v1252_v54  ;;  %v1237_v56 = vmul.f32 0.03125, %v1235_v55  ;;  %vm1260_vm9 = vweird.f32 %v1252_v54 }
 0x8e0   :  { %v1243_v57 = vpop.xlane.xlu0 %1242 }
 0x8e1   :  { %v1247_v58 = vmul.f32 %v1237_v56, %v1237_v56  ;;  %v1245_v59 = vmul.f32 0.03125, %v1243_v57  ;;  %v1251_v25 = vsub.f32 %v2471_v38, %v1237_v56 }
 0x8e3   :  { %v1249_v60 = vsub.f32 %v1245_v59, %v1247_v58 }
 0x8e5   :  { %v1841_v61 = vpop.eup %1840  ;;  %v1253_v62 = vadd.f32 1e-05, %v1249_v60 }
 0x8e6   :  { %v1255_v63 = vmul.f32 %v1841_v61, %v1252_v54  ;;  %v824_v0 = vpop.xlane.xlu1 %823  ;;  %vm1261_vm8 = vweird.f32 %v1841_v61 }
 0x8e7   :  { %1842 = vrsqrt.f32 %v1253_v62  ;;  %v825_v1 = vrot.slane %v824_v0, 4  ;;  %vm1262_vm10 = vmor %vm1260_vm9, %vm1261_vm8  ;;  %vm1270_vm12 = vweird.f32 %v1253_v62 }
 0x8e8   :  { %v1256_v2 = vmul.f32 %v1841_v61, %v1255_v63 }
 0x8e9   :  { %v826_v3 = vadd.f32 %v825_v1, %v824_v0 }
 0x8ea   :  { %v1257_v6 = vmul.f32 0.5, %v1256_v2 }
 0x8eb   :  { %v827_v7 = vrot.slane %v826_v3, 2 }
 0x8ec   :  { %v1258_v10 = vsub.f32 1.5, %v1257_v6 }
 0x8ed   :  { %v1843_v11 = vpop.eup %1842  ;;  %v828_v12 = vadd.f32 %v827_v7, %v826_v3 }
 0x8ee   :  { %v1259_v13 = vmul.f32 %v1841_v61, %v1258_v10  ;;  %v1265_v14 = vmul.f32 %v1843_v11, %v1253_v62  ;;  %vm1271_vm11 = vweird.f32 %v1843_v11 }
 0x8ef   :  { %v829_v15 = vrot.slane %v828_v12, 1  ;;  %vm1272_vm13 = vmor %vm1270_vm12, %vm1271_vm11 }
 0x8f0   :  { %v1266_v16 = vmul.f32 %v1843_v11, %v1265_v14  ;;  %v1263_v18 = vsel %vm1262_vm10, %v1841_v61, %v1259_v13 }
 0x8f1   :  { %v830_v17 = vadd.f32 %v829_v15, %v828_v12  ;;  %v1274_v22 = vmul.f32 %v1263_v18, %v1250_v20 }
 0x8f2   :  { %v1267_v19 = vmul.f32 0.5, %v1266_v16 }
 0x8f3   :  { %1787 = vpush %v830_v17  ;;  %v1279_v28 = vmul.f32 %v1825_v23, %v1274_v22 }
 0x8f4   :  { %v1268_v21 = vsub.f32 1.5, %v1267_v19 }
 0x8f5   :  { %v1284_v31 = vadd.f32 %v1826_v29, %v1279_v28 }
 0x8f6   :  { %v1269_v24 = vmul.f32 %v1843_v11, %v1268_v21 }
 0x8f8   :  { %v1273_v26 = vsel %vm1272_vm13, %v1843_v11, %v1269_v24 }
 0x8f9   :  { %v1275_v27 = vmul.f32 %v1273_v26, %v1251_v25 }
 0x8fb   :  { %v1280_v30 = vmul.f32 %v1825_v23, %v1275_v27 }
 0x8fd   :  { %v1285_v32 = vadd.f32 %v1826_v29, %v1280_v30 }
 0x8ff   :  { %v1303_v33 = vpack.c.bf16 %v1285_v32, %v1284_v31 }
 0x901   :  { %1365 = vmatmul.bf16.vlgmr.msra.gmra.mxu2 %v1303_v33 }
 0x924   :  { %s1788_s10 = spop %1787 }
 0x925   :  { %833 = sst [smem:[#allocation25]] %s1788_s10 }
 0x926   :  { %1394 = dma.smem_to_hbm %s2230_s9, 16, %s1392_s14, [#allocation5]  }
 0x984   :  { %v1366_v35 = vpop.f32.mrf.mxu2 }
 0x985   :  { %v1367_v36 = vadd.f32 %v1827_v34, %v1366_v35 }
 0x987   :  { %1371 = vst [vmem:[#allocation24] sm:$0xff] %v1367_v36 }
 0x98c   :  { %v1368_v37 = vpop.f32.mrf.mxu2 }
 0x98d   :  { %v1369_v38 = vadd.f32 %v1827_v34, %v1368_v37 }
 0x98f   :  { %1372 = vst [vmem:[#allocation24 + $0x8] sm:$0xff] %v1369_v38 }
 0x990   :  { %1385 = dma.vmem_to_hbm [thread:$0]  %s1378_s16, 256, %s1380_s25, [#allocation4], %s2224_s22, %s2224_s22, %s2225_s26  }
 0x991   :  { %2206 = dma.done.wait [#allocation4], 256  }
 0x992   :  { %2207 = vsyncadd [#allocation4], 4294967040 }
 0x993   :  { %2208 = dma.done.wait [#allocation5], 16  }
 0x994   :  { %2209 = vsyncadd [#allocation5], 4294967280 }
 0x995   :  { %1403 = sfence }
 0x996   :  { %1404 = vsyncpa [#allocation3], 1 }
 0x997   :  { %1405 = vsyncpa [#allocation7], 1 }
 0x998   :  { %1406 = vsyncpa [#allocation10], 1 }
 0x999   :  { %1407 = vsyncpa [#allocation13], 1 }
 0x99a   :  { %1408 = vsyncpa [#allocation16], 1 }
 0x99b   :  { %1409 = vsyncpa [#allocation19], 1 }
 0x99c   :  { %1410 = vsyncpa [#allocation22], 1 }
 0x99d   :  { %1411 = vsyncpa [#allocation4], 1 }
 0x99e   :  { %1412 = vsyncpa [#allocation5], 1 }

</bundles_post_ra>
